<compile_context>
chip_gen: v7x
topology: tpu7x:2x2x1
jax: 0.10.0
libtpu: 0.0.40
codegen_flags: <defaults>
</compile_context>

<pallas_src>
from collections import OrderedDict

import numpy as np
import jax
import jax.numpy as jnp
from jax.experimental import pallas as pl
from jax.experimental.pallas import tpu as pltpu


# ---------------------------------------------------------------------------
# Bilinear interpolation matrices (PyTorch align_corners=False semantics)
# ---------------------------------------------------------------------------
def _bilinear_matrix(out_size: int, in_size: int) -> np.ndarray:
    """W of shape (out, in) s.t. y = W @ x reproduces F.interpolate
    (mode='bilinear', align_corners=False) along one spatial axis."""
    W = np.zeros((out_size, in_size), dtype=np.float32)
    if in_size == out_size:
        np.fill_diagonal(W, 1.0)
        return W
    scale = in_size / out_size
    for i in range(out_size):
        src = (i + 0.5) * scale - 0.5
        src = max(src, 0.0)                      # PyTorch clamps negatives
        i0 = min(int(np.floor(src)), in_size - 1)
        i1 = min(i0 + 1, in_size - 1)
        l1 = src - i0
        W[i, i0] += 1.0 - l1
        W[i, i1] += l1
    return W


# ---------------------------------------------------------------------------
# VMEM sizing (sized against v7x's 64 MiB physical per-TC VMEM; safe on
# v5e/v6e which have 128 MiB).
# ---------------------------------------------------------------------------
_MIB = 1 << 20
_TILE_BUDGET_BYTES = 32 * _MIB     # per-step stage-2 buffer budget for TH
_VMEM_HEADROOM = 16 * _MIB         # slack for Mosaic-internal scratch/copies
_VMEM_CAP = 52 * _MIB              # stay under v7x's 64 MiB physical VMEM


def _ru(x: int, m: int) -> int:
    return ((x + m - 1) // m) * m


def _vmem_limit(footprint_bytes: int) -> int:
    return int(min(_VMEM_CAP, footprint_bytes + _VMEM_HEADROOM))


def _stage2_footprint(TH: int, K: int, W: int, h: int, out_isz: int) -> int:
    """Lane/sublane-padded, double-buffered per-step VMEM bytes for stage 2."""
    W_l = _ru(W, 128)
    out_blk = 2 * K * _ru(TH, 8) * W_l * out_isz            # output tile x2
    z1_blk = 2 * K * _ru(h, 16) * W_l * 2                   # z1 (bf16) x2
    wh_blk = 2 * _ru(TH, 16) * _ru(h, 128) * 2              # wh tile (bf16) x2
    interm = (K * _ru(TH, 8) * W_l * 4                      # f32 einsum result
              + K * _ru(TH, 16) * _ru(h, 128) * 2)          # broadcast wh (bf16)
    return out_blk + z1_blk + wh_blk + interm


def _stage1_footprint(C: int, K: int, h: int, w: int, W: int) -> int:
    W_l, w_l = _ru(W, 128), _ru(w, 128)
    f_blk = 2 * C * _ru(h, 16) * w_l * 2
    wct_blk = 2 * _ru(K, 16) * _ru(C, 128) * 2
    wwt_blk = 2 * _ru(w, 16) * W_l * 2
    z1_blk = 2 * K * _ru(h, 16) * W_l * 2
    interm = (C * _ru(h * w, 128) * 2                       # (C, h*w) relayout
              + K * _ru(h, 8) * w_l * 4                     # zc f32
              + K * _ru(h, 16) * w_l * 2                    # zc bf16
              + K * _ru(h, 8) * W_l * 4)                    # z1 f32
    return 2 * (f_blk + wct_blk + wwt_blk + z1_blk + interm)


def _pick_tile_h(H: int, K: int, W: int, h: int, out_isz: int) -> int:
    """Largest multiple-of-8 TH (<= 256) whose per-step stage-2 footprint fits
    the budget.  Prefer exact divisors of H; otherwise minimise the padded-row
    compute waste of the clipped last block (e.g. H=513 -> TH with small
    ceil(H/TH)*TH - H)."""
    cap = min(256, _ru(H, 8))
    cands = [th for th in range(8, cap + 1, 8)
             if _stage2_footprint(th, K, W, h, out_isz) <= _TILE_BUDGET_BYTES]
    if not cands:
        return 8
    divs = [th for th in cands if H % th == 0]
    if divs:
        return max(divs)
    return min(cands, key=lambda th: ((-(-H // th)) * th, -th))


# ---------------------------------------------------------------------------
# Stage 1: 1x1 classifier at LOW resolution + width bilinear resize.
# Grid = (pseudo-batch B,).  Tiny (few % of the FLOPs / HBM traffic); runs
# fully outside the main stage-2 pipeline, so there is no per-b bubble.
# ---------------------------------------------------------------------------
def _classify_width_kernel(f_ref, wct_ref, wwt_ref, z1_ref):
    # f_ref  : (1, C, h, w)  bf16  low-res features of one pseudo-batch element
    # wct_ref: (1, K, C)     bf16  bias-free 1x1 classifier weight of this head
    # wwt_ref: (w, W)        bf16  bilinear width-interp matrix (transposed)
    # z1_ref : (1, K, h, W)  bf16  classifier + width-resized features
    zc = jnp.einsum('kc,chw->khw', wct_ref[0], f_ref[0],
                    preferred_element_type=jnp.float32)
    z1 = jnp.einsum('khw,wW->khW', zc.astype(jnp.bfloat16), wwt_ref[...],
                    preferred_element_type=jnp.float32)
    z1_ref[0] = z1.astype(z1_ref.dtype)


# ---------------------------------------------------------------------------
# Stage 2: height bilinear resize, tiled over the OUTPUT height.
# Grid = (B, ceil(H / TH)); both axes parallel (no carried state).
# ---------------------------------------------------------------------------
def _height_resize_kernel(z1_ref, wh_ref, o_ref):
    # z1_ref: (1, K, h, W)  bf16  (block index only changes with b -> the
    #                             pipeline skips re-fetching it across t)
    # wh_ref: (TH, h)       bf16  bilinear height-interp rows for this H tile
    # o_ref : (1, K, TH, W)       logits tile, NKHW layout, W lane-dense
    K = z1_ref.shape[1]
    TH, h = wh_ref.shape
    whb = jnp.broadcast_to(wh_ref[...][None], (K, TH, h))
    # One K-batched contraction over h -> (K, TH, W), stored directly (no
    # per-class unrolled matmuls, no transpose before the store).
    o_ref[0] = jnp.einsum('kTh,khW->kTW', whb, z1_ref[0],
                          preferred_element_type=jnp.float32).astype(o_ref.dtype)


def fused_upsample_classify(feats_nchw, wclf_kc, out_hw, *,
                            tile_h=None, out_dtype=jnp.float32):
    """Fused bilinear upsample (align_corners=False) + bias-free 1x1 conv.

    feats_nchw: (B, C, h, w) features (pseudo-batch over heads*batch)
    wclf_kc   : (B, K, C)    per-pseudo-batch classifier weight
    returns   : (B, K, H, W) logits (NKHW, W lane-dense, dtype=out_dtype)
    """
    B, C, h, w = feats_nchw.shape
    K = wclf_kc.shape[1]
    H, W = int(out_hw[0]), int(out_hw[1])
    out_isz = jnp.dtype(out_dtype).itemsize

    if tile_h is not None and tile_h >= 1 and (tile_h % 8 == 0 or tile_h == H):
        TH = int(tile_h)
    else:
        TH = _pick_tile_h(H, K, W, h, out_isz)
    num_t = -(-H // TH)
    H_pad = num_t * TH

    # Interp matrices; all bf16 casts hoisted out of the kernels.
    wh_np = _bilinear_matrix(H, h)                                  # (H, h)
    if H_pad != H:
        # Zero-pad wh rows so the wh tile reads stay in-bounds; the matching
        # out-of-range rows of the last output block are clipped on store, so
        # the HBM output stays exactly (B, K, H, W) -> no wrapper slice copy.
        wh_np = np.concatenate(
            [wh_np, np.zeros((H_pad - H, h), np.float32)], axis=0)
    wh = jnp.asarray(wh_np, dtype=jnp.bfloat16)                     # (H_pad, h)
    wwt = jnp.asarray(_bilinear_matrix(W, w).T, dtype=jnp.bfloat16)  # (w, W)
    feats = feats_nchw.astype(jnp.bfloat16)
    wclf = wclf_kc.astype(jnp.bfloat16)

    # ---- stage 1: (K,C) x (C,h,w) classifier + (.,w) x (w,W) width resize ---
    z1 = pl.pallas_call(
        _classify_width_kernel,
        out_shape=jax.ShapeDtypeStruct((B, K, h, W), jnp.bfloat16),
        grid_spec=pltpu.PrefetchScalarGridSpec(
            num_scalar_prefetch=0,
            grid=(B,),
            in_specs=[
                pl.BlockSpec((1, C, h, w), lambda b: (b, 0, 0, 0)),
                pl.BlockSpec((1, K, C), lambda b: (b, 0, 0)),
                pl.BlockSpec((w, W), lambda b: (0, 0)),
            ],
            out_specs=pl.BlockSpec((1, K, h, W), lambda b: (b, 0, 0, 0)),
        ),
        compiler_params=pltpu.CompilerParams(
            dimension_semantics=("parallel",),
            vmem_limit_bytes=_vmem_limit(_stage1_footprint(C, K, h, w, W))),
    )(feats, wclf, wwt)

    # ---- stage 2: (TH,h) x (h,W) height resize per class, tiled over H -----
    out = pl.pallas_call(
        _height_resize_kernel,
        out_shape=jax.ShapeDtypeStruct((B, K, H, W), out_dtype),
        grid_spec=pltpu.PrefetchScalarGridSpec(
            num_scalar_prefetch=0,
            grid=(B, num_t),
            in_specs=[
                pl.BlockSpec((1, K, h, W), lambda b, t: (b, 0, 0, 0)),
                pl.BlockSpec((TH, h), lambda b, t: (t, 0)),
            ],
            out_specs=pl.BlockSpec((1, K, TH, W), lambda b, t: (b, 0, t, 0)),
        ),
        compiler_params=pltpu.CompilerParams(
            # No carried state -> both axes parallel (megacore gets work on
            # the H-tile axis even when B == 1, e.g. v7x small-batch).
            dimension_semantics=("parallel", "parallel"),
            vmem_limit_bytes=_vmem_limit(
                _stage2_footprint(TH, K, W, h, out_isz))),
    )(z1, wh)
    return out


# ---------------------------------------------------------------------------
# Parameter init (matches nn.init.xavier_uniform_ on a Conv2d weight)
# ---------------------------------------------------------------------------
def _xavier_uniform(key, shape):
    # shape = (out_c, in_c, kh, kw)
    fan_in = shape[1] * shape[2] * shape[3]
    fan_out = shape[0] * shape[2] * shape[3]
    bound = float(np.sqrt(6.0 / (fan_in + fan_out)))
    return jax.random.uniform(key, shape, jnp.float32, -bound, bound)


def _det_weight(shape, seed, scale=0.05):
    return jax.random.normal(jax.random.PRNGKey(seed), shape, jnp.float32) * scale


# ---------------------------------------------------------------------------
# Stubbed pretrained components (backbone / ASPP / aux_net are EXTERNAL to the
# module — they come from `pretrained_model` — so they are replaced by
# deterministic stand-ins that only reproduce the feature shapes).
# ---------------------------------------------------------------------------
# TODO(synk): real pretrained ResNet backbone, ASPP and aux_net are not part of
#             this module's definition; stubbed with deterministic avg-pool
#             downsampling + fixed channel projections.
def _stub_backbone(x_nchw):
    N, C, H, W = x_nchw.shape
    s = 4  # synthetic output stride
    pooled = x_nchw.reshape(N, C, H // s, s, W // s, s).mean(axis=(3, 5))
    feats = OrderedDict()
    feats['layer3'] = jnp.einsum('nchw,kc->nkhw', pooled, _det_weight((1024, C), 1))
    feats['layer4'] = jnp.einsum('nchw,kc->nkhw', pooled, _det_weight((2048, C), 2))
    return feats


def _stub_aspp(layer4):
    return jnp.einsum('nchw,kc->nkhw', layer4, _det_weight((256, layer4.shape[1]), 3))


def _stub_aux_net(layer3):
    return jnp.einsum('nchw,kc->nkhw', layer3, _det_weight((256, layer3.shape[1]), 4))


# ---------------------------------------------------------------------------
# Deeplabv3 module (JAX/Pallas version of the PyTorch forward)
# ---------------------------------------------------------------------------
class Deeplabv3:
    def __init__(self, n_classes, aux=False, key=None, tile_h=None,
                 logits_dtype=jnp.float32):
        # logits_dtype=jnp.float32 preserves the PyTorch output dtype; pass
        # jnp.bfloat16 on writeback-bound generations (v5e, partly v6e) to
        # halve HBM output traffic (accumulation stays f32 either way).
        if key is None:
            key = jax.random.PRNGKey(0)
        k_clf, k_aux = jax.random.split(key)
        self.n_classes = n_classes
        self.tile_h = tile_h
        self.logits_dtype = logits_dtype
        # nn.Conv2d(256, n_classes, 1, 1, 0, 1, bias=False) + xavier_uniform_
        self.classifier_w = _xavier_uniform(k_clf, (n_classes, 256, 1, 1))
        self.aux_clf_w = _xavier_uniform(k_aux, (n_classes, 256, 1, 1)) if aux else None

    def forward(self, inputs, return_intermediate=False):
        x = inputs['image']                       # NCHW, like PyTorch
        input_shape = x.shape[-2:]

        features = _stub_backbone(x)
        features['aspp'] = _stub_aspp(features['layer4'])
        if self.aux_clf_w is not None:
            features['aux'] = _stub_aux_net(features['layer3'])

        if return_intermediate:
            return features

        # Fuse both heads (F.interpolate bilinear align_corners=False +
        # bias-free 1x1 conv) by stacking them along a pseudo-batch axis
        # (shared wh/wwt, one launch pair, more parallel grid work).
        N = x.shape[0]
        head_feats = [features['aspp']]
        head_weights = [self.classifier_w]
        if 'aux' in features:
            head_feats.append(features['aux'])
            head_weights.append(self.aux_clf_w)

        feats_all = jnp.concatenate(head_feats, axis=0)            # (B, 256, h, w)
        wct_all = jnp.concatenate(
            [jnp.broadcast_to(wt[:, :, 0, 0][None], (N,) + wt.shape[:2])
             for wt in head_weights], axis=0)                      # (B, K, 256)

        seg_all = fused_upsample_classify(
            feats_all, wct_all, input_shape,
            tile_h=self.tile_h, out_dtype=self.logits_dtype)       # (B, K, H, W)

        result = OrderedDict()
        if 'aux' in features:
            result['aux'] = OrderedDict()
            result['aux']['seg'] = seg_all[N:2 * N]
        result['out'] = OrderedDict()
        result['out']['seg'] = seg_all[:N]
        return result


if __name__ == "__main__":
    key = jax.random.PRNGKey(0)
    k_img, k_model = jax.random.split(key)

    N, C_in, H, W, n_classes = 2, 3, 16, 16, 5
    x = jax.random.normal(k_img, (N, C_in, H, W), jnp.float32)     # NCHW image

    # tile_h=8 -> two output-height tiles per pseudo-batch element, exercising
    # the tiled stage-2 pipeline (pipelined z1 + wh tiles, NKHW block stores).
    model = Deeplabv3(n_classes=n_classes, aux=True, key=k_model, tile_h=8)
    result = model.forward({'image': x})

    seg = jax.block_until_ready(result['out']['seg'])
    seg_aux = jax.block_until_ready(result['aux']['seg'])

    assert seg.shape == (N, n_classes, H, W), seg.shape
    assert seg_aux.shape == (N, n_classes, H, W), seg_aux.shape
    assert bool(jnp.all(jnp.isfinite(seg))) and bool(jnp.all(jnp.isfinite(seg_aux)))

    # Pure-JAX f32 reference in the original PyTorch order (resize THEN 1x1
    # conv); the kernel applies classifier-first with bf16 operands, so allow
    # small slack.
    feats = model.forward({'image': x}, return_intermediate=True)
    h, w = feats['aspp'].shape[-2:]
    wh_f32 = jnp.asarray(_bilinear_matrix(H, h))
    ww_f32 = jnp.asarray(_bilinear_matrix(W, w))

    def ref_head(f, w_oihw):
        up = jnp.einsum('Th,nchw,Ww->ncTW', wh_f32, f, ww_f32)
        return jnp.einsum('kc,ncTW->nkTW', w_oihw[:, :, 0, 0], up)

    ref = ref_head(feats['aspp'], model.classifier_w)
    ref_aux = ref_head(feats['aux'], model.aux_clf_w)
    err = max(float(jnp.max(jnp.abs(seg - ref))),
              float(jnp.max(jnp.abs(seg_aux - ref_aux))))
    assert err < 2.5e-2, f"kernel vs reference mismatch: {err}"

    print("KERNEL_OK")
</pallas_src>

<mosaic_0001>
module attributes {stable_mosaic.version = 11 : i64} {
  func.func @_classify_width_kernel(%arg0: i32, %arg1: memref<1x256x4x4xbf16, #tpu.memory_space<vmem>>, %arg2: memref<1x5x256xbf16, #tpu.memory_space<vmem>>, %arg3: memref<4x16xbf16, #tpu.memory_space<vmem>>, %arg4: memref<1x5x4x16xbf16, #tpu.memory_space<vmem>>) attributes {dimension_semantics = [#tpu.dimension_semantics<parallel>], iteration_bounds = array<i64: 4>, scalar_prefetch = 0 : i64, scratch_operands = 0 : i64, tpu.core_type = #tpu.core_type<tc>, window_params = [{transform_indices = @transform_0, window_bounds = array<i64: 1, 256, 4, 4>}, {transform_indices = @transform_1, window_bounds = array<i64: 1, 5, 256>}, {pipeline_mode = #tpu.pipeline_mode<synchronous>, transform_indices = @transform_2, window_bounds = array<i64: 4, 16>}, {transform_indices = @transform_3, window_bounds = array<i64: 1, 5, 4, 16>}]} {
    %c0 = arith.constant 0 : index
    %c0_0 = arith.constant 0 : index
    %c0_1 = arith.constant 0 : index
    %0 = vector.load %arg2[%c0, %c0_0, %c0_1] : memref<1x5x256xbf16, #tpu.memory_space<vmem>>, vector<1x5x256xbf16>
    %1 = vector.shape_cast %0 : vector<1x5x256xbf16> to vector<5x256xbf16>
    %c0_2 = arith.constant 0 : index
    %c0_3 = arith.constant 0 : index
    %c0_4 = arith.constant 0 : index
    %c0_5 = arith.constant 0 : index
    %2 = vector.load %arg1[%c0_2, %c0_3, %c0_4, %c0_5] : memref<1x256x4x4xbf16, #tpu.memory_space<vmem>>, vector<1x256x4x4xbf16>
    %3 = vector.shape_cast %2 : vector<1x256x4x4xbf16> to vector<256x4x4xbf16>
    "tpu.trace_start"() <{level = 10 : i32, message = "kc,chw->khw"}> : () -> ()
    %cst = arith.constant dense<0.000000e+00> : vector<5x4x4xf32>
    %4 = tpu.matmul %1, %3, %cst {dimension_numbers = #tpu.dot_dimension_numbers<[1], [0], [0], [1, 2], [0, 0, 1, 1, 1, 2], [], []>} : vector<5x256xbf16>, vector<256x4x4xbf16>, vector<5x4x4xf32> -> vector<5x4x4xf32>
    "tpu.trace_stop"() : () -> ()
    %5 = arith.truncf %4 : vector<5x4x4xf32> to vector<5x4x4xbf16>
    %c0_6 = arith.constant 0 : index
    %c0_7 = arith.constant 0 : index
    %6 = vector.load %arg3[%c0_6, %c0_7] : memref<4x16xbf16, #tpu.memory_space<vmem>>, vector<4x16xbf16>
    "tpu.trace_start"() <{level = 10 : i32, message = "khw,wW->khW"}> : () -> ()
    %cst_8 = arith.constant dense<0.000000e+00> : vector<5x4x16xf32>
    %7 = tpu.matmul %5, %6, %cst_8 {dimension_numbers = #tpu.dot_dimension_numbers<[2], [0], [0, 1], [1], [0, 0, 0, 1, 1, 1], [], []>} : vector<5x4x4xbf16>, vector<4x16xbf16>, vector<5x4x16xf32> -> vector<5x4x16xf32>
    "tpu.trace_stop"() : () -> ()
    %8 = arith.truncf %7 : vector<5x4x16xf32> to vector<5x4x16xbf16>
    %c0_9 = arith.constant 0 : index
    %c0_10 = arith.constant 0 : index
    %c0_11 = arith.constant 0 : index
    %c0_12 = arith.constant 0 : index
    %9 = vector.load %arg4[%c0_9, %c0_10, %c0_11, %c0_12] : memref<1x5x4x16xbf16, #tpu.memory_space<vmem>>, vector<1x5x4x16xbf16>
    %10 = vector.shape_cast %9 : vector<1x5x4x16xbf16> to vector<5x4x16xbf16>
    %11 = vector.shape_cast %8 : vector<5x4x16xbf16> to vector<1x5x4x16xbf16>
    tpu.vector_store %arg4[%c0_9, %c0_10, %c0_11, %c0_12], %11 {strides = array<i32>} : memref<1x5x4x16xbf16, #tpu.memory_space<vmem>>, vector<1x5x4x16xbf16>,
    return
  }
  func.func @transform_0(%arg0: i32) -> (i32, i32, i32, i32) {
    %c0_i32 = arith.constant 0 : i32
    %c0_i32_0 = arith.constant 0 : i32
    %c0_i32_1 = arith.constant 0 : i32
    %c0_i32_2 = arith.constant 0 : i32
    return %arg0, %c0_i32, %c0_i32_0, %c0_i32_1 : i32, i32, i32, i32
  }
  func.func @transform_1(%arg0: i32) -> (i32, i32, i32) {
    %c0_i32 = arith.constant 0 : i32
    %c0_i32_0 = arith.constant 0 : i32
    %c0_i32_1 = arith.constant 0 : i32
    return %arg0, %c0_i32, %c0_i32_0 : i32, i32, i32
  }
  func.func @transform_2(%arg0: i32) -> (i32, i32) {
    %c0_i32 = arith.constant 0 : i32
    %c0_i32_0 = arith.constant 0 : i32
    %c0_i32_1 = arith.constant 0 : i32
    return %c0_i32, %c0_i32_0 : i32, i32
  }
  func.func @transform_3(%arg0: i32) -> (i32, i32, i32, i32) {
    %c0_i32 = arith.constant 0 : i32
    %c0_i32_0 = arith.constant 0 : i32
    %c0_i32_1 = arith.constant 0 : i32
    %c0_i32_2 = arith.constant 0 : i32
    return %arg0, %c0_i32, %c0_i32_0, %c0_i32_1 : i32, i32, i32, i32
  }
}

</mosaic_0001>

<bundles_post_ra>
// kernel: tpu_custom_call.1
= control target key start
LH: loop header
LB: loop body
LE: loop exit
PB: predicated region body
PF: predicated region fallthrough
CT: control target
= control target key end

     0   :  { %8 = vsyncpa [#allocation3], 0  ;;  %s6020_s0 = inlined_call_operand.vmem [shape: bf16[4,256,4,4], index: 0, kind: input, shape index: {}]   ;;  %s6021_s1 = inlined_call_operand.vmem [shape: bf16[4,5,256], index: 1, kind: input, shape index: {}]   ;;  %s6022_s2 = inlined_call_operand.vmem [shape: bf16[4,16], index: 2, kind: input, shape index: {}]   ;;  %s6023_s3 = inlined_call_operand.hbm [shape: bf16[4,5,4,16], index: 3, kind: output, shape index: {}]  }
   0x1   :  { %10 = vsyncpa [#allocation3 + $0x1], 0  ;;  %s4517_s12 = smov 0   ;;  %s4519_s13 = smov 0  }
   0x2   :  { %s4521_s14 = smov 0   ;;  %s4523_s15 = smov 0  }
   0x3 LB: > { %s4538_s16 = sadd.s32 4294967295, %s4482_s15   ;;  %s4058_s17 = sadd.s32 4294967294, %s4482_s15   ;;  %s4482_s15 = sphi %s4523_s15, %s6386_s15   ;;  %s4478_s14 = sphi %s4521_s14, %s6385_s14   ;;  %s4474_s13 = sphi %s4519_s13, %s6384_s13   ;;  %s4470_s12 = sphi %s4517_s12, %s6383_s12  }
   0x4   : > { %s4542_s18 = sadd.s32 1, %s4482_s15   ;;  %s96_s19 = sadd.s32 1, %s4478_s14 }
   0x5   : > { %s93_s20 = ssub.s32 %s4482_s15, %s4542_s18  ;;  %p106_p0 = scmp.ne.s32.totalorder %s4478_s14, %s4474_s13 }
   0x6   : > { %p94_p1 = scmp.eq.s32.totalorder %s93_s20, 0  ;;  %p107_p2 = scmp.eq.s32.totalorder %s4538_s16, 3 }
   0x7   : > { %p112_p3 = scmp.ne.s32.totalorder %s4474_s13, %s4470_s12  ;;  %p113_p4 = scmp.eq.s32.totalorder %s4058_s17, 3 }
   0x8   : > { %s4553_s21 = scalar_select %p94_p1, %s4478_s14, %s96_s19  }
   0x9   : > { %p4555_p5 = por %p107_p2, %p106_p0  ;;  %p4559_p6 = por %p113_p4, %p112_p3 }
   0xa   : > { %p4061_p7 = scmp.ge.s32.totalorder %s4482_s15, 1  ;;  %p150_p8 = scmp.lt.s32.totalorder %s4482_s15, 5 }
   0xc   : > { %p151_p9 = pnand %p4061_p7, %p150_p8 }
   0xe   : > { %154 = sbr.rel (%p151_p9) target bundleno = 971 (0x3cb), region = 32 }
  0x15   : > { %p179_p10 = scmp.lt.s32.totalorder %s4538_s16, 3  ;;  %v4484_v0 = vmov 1934713408   ;;  %v451_v2 = vlaneseq  ;;  %v4485_v5 = vmov 1983009808   ;;  %v6029_v26 = vmov 0  }
  0x16   : > { %v449_v1 = vunpack.c.l.s4 %v4484_v0  ;;  %v2370_v6 = vunpack.c.l.s4 %v4485_v5  ;;  %s4487_s29 = smov 4   ;;  %s4488_s30 = smov 8   ;;  %vm3551_vm0 = vcmask 31744   ;;  %vm3600_vm1 = vcmask 64512  }
  0x17   : > { %s4567_s24 = scalar_select %p179_p10, %s4538_s16, 3  ;;  %v452_v4 = vshrl.u32 %v451_v2, 7  ;;  %vm3633_vm2 = vcmask 97280   ;;  %vm3901_vm3 = vcmask 1041408   ;;  %vm3964_vm4 = vcmask 123904  }
  0x18   : > { %v450_v3 = vunpack.c.0.s8 %v449_v1  ;;  %v2371_v8 = vunpack.c.0.s8 %v2370_v6  ;;  %s4489_s4 = smov 12   ;;  %s4491_s11 = smov 120  }
  0x19   : > { %s4075_s25 = sshll.u32 %s4567_s24, 9  ;;  %s4076_s5 = sshll.u32 %s4567_s24, 3 }
  0x1a   : > { %s4573_s28 = scalar_lea.vmem %s6020_s0, %s4075_s25  ;;  %v4575_v7 = vsub.s32 %v450_v3, %v452_v4  ;;  %v4601_v17 = vsub.s32 %v2371_v8, %v452_v4  ;;  %s188_s8 = scalar_lea.vmem %s6021_s1, %s4076_s5 }
  0x1b   : > { %v4578_v9 = vld.sshfl [vmem:[%s4573_s28 + $0x100] sm:$0x33 pattern:$0x73516240]  ;;  %s4492_s17 = smov 124   ;;  %s4493_s19 = smov 116  }
  0x1c   : > { %6138 = vst [vmem:[#allocation5_spill] sm:$0xff] %v4575_v7  ;;  %v4581_v10 = vld.sshfl [vmem:[%s4573_s28 + $0x102] sm:$0x33 pattern:$0x73516240]  ;;  %v1986_v18 = vshrl.u32 %v4578_v9, 16  ;;  %v4613_v27 = vcombine.high %v4578_v9, %v6029_v26 }
  0x1d   : > { %v4584_v11 = vld.sshfl [vmem:[%s4573_s28 + $0x108] sm:$0x33 pattern:$0x73516240]  ;;  %v1987_v19 = vshrl.u32 %v4581_v10, 16  ;;  %v4617_v30 = vcombine.high %v4581_v10, %v6029_v26  ;;  %s176_s20 = sand.u32 1, %s4474_s13  }
  0x1e   : > { %v4587_v12 = vld.sshfl [vmem:[%s4573_s28 + $0x10a] sm:$0x33 pattern:$0x73516240]  ;;  %v1998_v20 = vshrl.u32 %v4584_v11, 16  ;;  %v4621_v31 = vcombine.high %v4584_v11, %v6029_v26  ;;  %s4109_s24 = smul.u32 10, %s176_s20 }
  0x1f   : > { %v4590_v13 = vld.sshfl [vmem:[%s4573_s28 + $0x110] sm:$0x33 pattern:$0x73516240]  ;;  %v1999_v21 = vshrl.u32 %v4587_v12, 16  ;;  %v1988_v28 = vpack.i.b16 %v1987_v19, %v1986_v18  ;;  %v4625_v34 = vcombine.high %v4587_v12, %v6029_v26  ;;  %v1991_v41 = vpack.i.b16 %v4617_v30, %v4613_v27  ;;  %s4110_s27 = smul.u32 160, %s4538_s16 }
  0x20   : > { %v4593_v14 = vld.sshfl [vmem:[%s4573_s28 + $0x112] sm:$0x33 pattern:$0x73516240]  ;;  %v2010_v22 = vshrl.u32 %v4590_v13, 16  ;;  %v4629_v35 = vcombine.high %v4590_v13, %v6029_v26  ;;  %s178_s25 = scalar_lea.vmem [#allocation2], %s4109_s24 }
  0x21   : > { %v4596_v15 = vld.sshfl [vmem:[%s4573_s28 + $0x118] sm:$0x33 pattern:$0x73516240]  ;;  %v2011_v23 = vshrl.u32 %v4593_v14, 16  ;;  %v2000_v29 = vpack.i.b16 %v1999_v21, %v1998_v20  ;;  %v4633_v37 = vcombine.high %v4593_v14, %v6029_v26  ;;  %v2003_v47 = vpack.i.b16 %v4625_v34, %v4621_v31  ;;  %s3984_s26 = sshll.u32 %s178_s25, 4  ;;  %s5969_s26 = int_to_ptr.vmem [resolvable:$true] %s3984_s26 }
  0x22   : > { %v4599_v16 = vld.sshfl [vmem:[%s4573_s28 + $0x11a] sm:$0x33 pattern:$0x73516240]  ;;  %v2022_v24 = vshrl.u32 %v4596_v15, 16  ;;  %v4637_v38 = vcombine.high %v4596_v15, %v6029_v26  ;;  %s4494_s5 = smov [#allocation2]  }
  0x23   : > { %v2023_v25 = vshrl.u32 %v4599_v16, 16  ;;  %v2012_v32 = vpack.i.b16 %v2011_v23, %v2010_v22  ;;  %v2775_v36 = vcombine.low %v1988_v28, %v2000_v29  ;;  %v4641_v39 = vcombine.high %v4599_v16, %v6029_v26  ;;  %v4648_v44 = vld.sshfl [vmem:[%s4573_s28] sm:$0x33 pattern:$0x73516240]  ;;  %s4424_s6 = sshll.u32 %s4494_s5, 4  ;;  %s4425_s6 = int_to_ptr.vmem [resolvable:$false] %s4424_s6 }
  0x24   : > { %6139 = vst [vmem:[#allocation6_spill] sm:$0xff] %v4648_v44  ;;  %v4651_v45 = vld.sshfl [vmem:[%s4573_s28 + $0x2] sm:$0x33 pattern:$0x73516240]  ;;  %v2015_v53 = vpack.i.b16 %v4633_v37, %v4629_v35  ;;  %v3079_v61 = vcombine.low %v1991_v41, %v2003_v47  ;;  %v1602_v3 = vshrl.u32 %v4648_v44, 16  ;;  %p4427_p0 = scmp.lt.s32.totalorder %s5969_s26, %s4425_s6 }
  0x25   : > { %v2024_v33 = vpack.i.b16 %v2023_v25, %v2022_v24  ;;  %6140 = vst [vmem:[#allocation7_spill] sm:$0xff] %v4651_v45  ;;  %v2783_v46 = vrot.slane %v2775_v36, %v4601_v17  ;;  %v4659_v50 = vld.sshfl [vmem:[%s4573_s28 + $0x8] sm:$0x33 pattern:$0x73516240]  ;;  %v2027_v58 = vpack.i.b16 %v4641_v39, %v4637_v38  ;;  %v1603_v5 = vshrl.u32 %v4651_v45, 16 }
  0x26   : > { %v4662_v51 = vld.sshfl [vmem:[%s4573_s28 + $0xa] sm:$0x33 pattern:$0x73516240]  ;;  %v3087_v2 = vrot.slane %v3079_v61, %v4601_v17  ;;  %v1614_v6 = vshrl.u32 %v4659_v50, 16  ;;  %v4698_v25 = vcombine.high %v4648_v44, %v6029_v26  ;;  %s4426_s7 = scalar_lea.vmem %s4425_s6, 320 }
  0x27   : > { %v2776_v40 = vcombine.low %v2012_v32, %v2024_v33  ;;  %v4670_v56 = vld.sshfl [vmem:[%s4573_s28 + $0x10] sm:$0x33 pattern:$0x73516240]  ;;  %v3080_v1 = vcombine.low %v2015_v53, %v2027_v58  ;;  %v1615_v8 = vshrl.u32 %v4662_v51, 16  ;;  %v1604_v23 = vpack.i.b16 %v1603_v5, %v1602_v3 }
  0x28   : > { %6141 = vst [vmem:[#allocation8_spill] sm:$0xff] %v4670_v56  ;;  %v4673_v57 = vld.sshfl [vmem:[%s4573_s28 + $0x12] sm:$0x33 pattern:$0x73516240]  ;;  %v1626_v18 = vshrl.u32 %v4670_v56, 16  ;;  %v4702_v32 = vcombine.high %v4651_v45, %v6029_v26  ;;  %v4706_v33 = vcombine.high %v4659_v50, %v6029_v26  ;;  %v4715_v41 = vcombine.high %v4670_v56, %v6029_v26 }
  0x29   : > { %v2790_v52 = vrot.slane %v2776_v40, %v4601_v17  ;;  %6142 = vst [vmem:[#allocation9_spill] sm:$0xff] %v4673_v57  ;;  %v4680_v62 = vld.sshfl [vmem:[%s4573_s28 + $0x18] sm:$0x33 pattern:$0x73516240]  ;;  %v3094_v4 = vrot.slane %v3080_v1, %v4601_v17  ;;  %v1627_v19 = vshrl.u32 %v4673_v57, 16  ;;  %v1616_v24 = vpack.i.b16 %v1615_v8, %v1614_v6 }
  0x2a   : > { %6143 = vst [vmem:[#allocation10_spill] sm:$0xff] %v4680_v62  ;;  %v4683_v63 = vld.sshfl [vmem:[%s4573_s28 + $0x1a] sm:$0x33 pattern:$0x73516240]  ;;  %v1638_v20 = vshrl.u32 %v4680_v62, 16  ;;  %v4711_v40 = vcombine.high %v4662_v51, %v6029_v26  ;;  %v4732_v61 = vcombine.high %v4680_v62, %v6029_v26  ;;  %v1607_v1 = vpack.i.b16 %v4702_v32, %v4698_v25 }
  0x2b   : > { %6144 = vst [vmem:[#allocation11_spill] sm:$0xff] %v4683_v63  ;;  %v2791_v0 = vcombine.low %v2783_v46, %v2790_v52  ;;  %v1639_v21 = vshrl.u32 %v4683_v63, 16  ;;  %v3095_v22 = vcombine.low %v3087_v2, %v3094_v4  ;;  %v1628_v28 = vpack.i.b16 %v1627_v19, %v1626_v18  ;;  %v4722_v47 = vld.sshfl [vmem:[%s4573_s28 + $0x120] sm:$0x33 pattern:$0x73516240] }
  0x2c   : > { %v2639_v36 = vcombine.low %v1604_v23, %v1616_v24  ;;  %v4719_v46 = vcombine.high %v4673_v57, %v6029_v26  ;;  %6145 = vst [vmem:[#allocation12_spill] sm:$0xff] %v4722_v47  ;;  %v4725_v52 = vld.sshfl [vmem:[%s4573_s28 + $0x122] sm:$0x33 pattern:$0x73516240]  ;;  %v1619_v6 = vpack.i.b16 %v4711_v40, %v4706_v33 }
  0x2d   : > { %2927 = vrot.lane.b32.xlu0 %v2791_v0, %s4487_s29  ;;  %v1640_v29 = vpack.i.b16 %v1639_v21, %v1638_v20  ;;  %3231 = vrot.lane.b32.xlu1 %v3095_v22, %s4488_s30  ;;  %6146 = vst [vmem:[#allocation13_spill] sm:$0xff] %v4725_v52  ;;  %v4728_v53 = vld.sshfl [vmem:[%s4573_s28 + $0x128] sm:$0x33 pattern:$0x73516240]  ;;  %v4736_v0 = vcombine.high %v4683_v63, %v6029_v26 }
  0x2e   : > { %6147 = vst [vmem:[#allocation14_spill] sm:$0xff] %v4728_v53  ;;  %v4741_v2 = vld.sshfl [vmem:[%s4573_s28 + $0x12a] sm:$0x33 pattern:$0x73516240]  ;;  %v2647_v5 = vrot.slane %v2639_v36, %v4601_v17  ;;  %v1631_v8 = vpack.i.b16 %v4719_v46, %v4715_v41  ;;  %v2943_v22 = vcombine.low %v1607_v1, %v1619_v6  ;;  %v2035_v36 = vshrl.u32 %v4725_v52, 16 }
  0x2f   : > { %v2640_v58 = vcombine.low %v1628_v28, %v1640_v29  ;;  %6148 = vst [vmem:[#allocation15_spill] sm:$0xff] %v4741_v2  ;;  %v4744_v3 = vld.sshfl [vmem:[%s4573_s28 + $0x130] sm:$0x33 pattern:$0x73516240]  ;;  %v1643_v21 = vpack.i.b16 %v4736_v0, %v4732_v61  ;;  %v2034_v29 = vshrl.u32 %v4722_v47, 16  ;;  %v4783_v54 = vcombine.high %v4725_v52, %v6029_v26 }
  0x30   : > { %6149 = vst [vmem:[#allocation16_spill] sm:$0xff] %v4744_v3  ;;  %v4747_v4 = vld.sshfl [vmem:[%s4573_s28 + $0x132] sm:$0x33 pattern:$0x73516240]  ;;  %v2951_v28 = vrot.slane %v2943_v22, %v4601_v17  ;;  %v2046_v60 = vshrl.u32 %v4728_v53, 16  ;;  %v4776_v22 = vcombine.high %v4722_v47, %v6029_v26 }
  0x31   : > { %6150 = vst [vmem:[#allocation17_spill] sm:$0xff] %v4747_v4  ;;  %v4755_v18 = vld.sshfl [vmem:[%s4573_s28 + $0x138] sm:$0x33 pattern:$0x73516240]  ;;  %v2654_v20 = vrot.slane %v2640_v58, %v4601_v17  ;;  %v2944_v24 = vcombine.low %v1631_v8, %v1643_v21  ;;  %v2047_v1 = vshrl.u32 %v4741_v2, 16  ;;  %v2036_v8 = vpack.i.b16 %v2035_v36, %v2034_v29 }
  0x32   : > { %6151 = vst [vmem:[#allocation18_spill] sm:$0xff] %v4755_v18  ;;  %v4758_v19 = vld.sshfl [vmem:[%s4573_s28 + $0x13a] sm:$0x33 pattern:$0x73516240]  ;;  %v2059_v6 = vshrl.u32 %v4747_v4, 16  ;;  %v4822_v43 = vcombine.high %v4755_v18, %v6029_v26  ;;  %v2039_v44 = vpack.i.b16 %v4783_v54, %v4776_v22 }
  0x33   : > { %6152 = vst [vmem:[#allocation19_spill] sm:$0xff] %v4758_v19  ;;  %v2655_v23 = vcombine.low %v2647_v5, %v2654_v20  ;;  %v2958_v58 = vrot.slane %v2944_v24, %v4601_v17  ;;  %v2058_v5 = vshrl.u32 %v4744_v3, 16  ;;  %v2070_v20 = vshrl.u32 %v4755_v18, 16 }
  0x34   : > { %v2071_v21 = vshrl.u32 %v4758_v19, 16  ;;  %v2048_v24 = vpack.i.b16 %v2047_v1, %v2046_v60  ;;  %v4779_v55 = vld.sshfl [vmem:[%s4573_s28 + $0x20] sm:$0x33 pattern:$0x73516240]  ;;  %v4800_v60 = vcombine.high %v4741_v2, %v6029_v26  ;;  %v6161_v47 = vmov 0  }
  0x35   : > { %2911 = vrot.lane.b32.xlu0 %v2655_v23, %s4487_s29  ;;  %v2959_v23 = vcombine.low %v2951_v28, %v2958_v58  ;;  %v2060_v59 = vpack.i.b16 %v2059_v6, %v2058_v5  ;;  %6153 = vst [vmem:[#allocation20_spill] sm:$0xff] %v4779_v55  ;;  %v4786_v36 = vld.sshfl [vmem:[%s4573_s28 + $0x22] sm:$0x33 pattern:$0x73516240]  ;;  %v4796_v28 = vcombine.high %v4728_v53, %v6029_v26 }
  0x36   : > { %v2072_v29 = vpack.i.b16 %v2071_v21, %v2070_v20  ;;  %6154 = vst [vmem:[#allocation21_spill] sm:$0xff] %v4786_v36  ;;  %v4789_v49 = vld.sshfl [vmem:[%s4573_s28 + $0x28] sm:$0x33 pattern:$0x73516240]  ;;  %v4804_v58 = vcombine.high %v4744_v3, %v6029_v26  ;;  %v2792_v1 = vcombine.low %v2036_v8, %v2048_v24  ;;  %v4818_v21 = vcombine.high %v4747_v4, %v6029_v26 }
  0x37   : > { %6155 = vst [vmem:[#allocation22_spill] sm:$0xff] %v4789_v49  ;;  %v4792_v48 = vld.sshfl [vmem:[%s4573_s28 + $0x2a] sm:$0x33 pattern:$0x73516240]  ;;  %3215 = vrot.lane.b32.xlu1 %v2959_v23, %s4488_s30  ;;  %v1650_v24 = vshrl.u32 %v4779_v55, 16  ;;  %v4839_v45 = vcombine.high %v4758_v19, %v6161_v47 }
  0x38   : > { %6156 = vst [vmem:[#allocation23_spill] sm:$0xff] %v4792_v48  ;;  %v4808_v5 = vld.sshfl [vmem:[%s4573_s28 + $0x30] sm:$0x33 pattern:$0x73516240]  ;;  %v2793_v42 = vcombine.low %v2060_v59, %v2072_v29  ;;  %v2800_v23 = vrot.slane %v2792_v1, %v4601_v17  ;;  %v1651_v3 = vshrl.u32 %v4786_v36, 16 }
  0x39   : > { %6157 = vst [vmem:[#allocation24_spill] sm:$0xff] %v4808_v5  ;;  %v4811_v6 = vld.sshfl [vmem:[%s4573_s28 + $0x32] sm:$0x33 pattern:$0x73516240]  ;;  %v1662_v2 = vshrl.u32 %v4789_v49, 16 }
  0x3a   : > { %6158 = vst [vmem:[#allocation25_spill] sm:$0xff] %v4811_v6  ;;  %v4814_v20 = vld.sshfl [vmem:[%s4573_s28 + $0x38] sm:$0x33 pattern:$0x73516240]  ;;  %v2807_v8 = vrot.slane %v2793_v42, %v4601_v17  ;;  %v1663_v4 = vshrl.u32 %v4792_v48, 16  ;;  %v1652_v59 = vpack.i.b16 %v1651_v3, %v1650_v24  ;;  %v2063_v3 = vpack.i.b16 %v4818_v21, %v4804_v58 }
  0x3b   : > { %6159 = vst [vmem:[#allocation26_spill] sm:$0xff] %v4814_v20  ;;  %v4825_v7 = vld.sshfl [vmem:[%s4573_s28 + $0x3a] sm:$0x33 pattern:$0x73516240]  ;;  %v1674_v53 = vshrl.u32 %v4808_v5, 16 }
  0x3c   : > { %6160 = vst [vmem:[#allocation27_spill] sm:$0xff] %v4825_v7  ;;  %v1675_v26 = vshrl.u32 %v4811_v6, 16  ;;  %v2808_v18 = vcombine.low %v2800_v23, %v2807_v8  ;;  %v1686_v29 = vshrl.u32 %v4814_v20, 16  ;;  %v1687_v1 = vshrl.u32 %v4825_v7, 16 }
  0x3d   : > { %v1664_v52 = vpack.i.b16 %v1663_v4, %v1662_v2  ;;  %v2051_v23 = vpack.i.b16 %v4800_v60, %v4796_v28  ;;  %v4850_v2 = vcombine.high %v4779_v55, %v6161_v47  ;;  %v4856_v4 = vcombine.high %v4786_v36, %v6161_v47 }
  0x3e   : > { %v1676_v42 = vpack.i.b16 %v1675_v26, %v1674_v53  ;;  %2929 = vrot.lane.b32.xlu0 %v2808_v18, %s4487_s29  ;;  %v1688_v63 = vpack.i.b16 %v1687_v1, %v1686_v29  ;;  %v2075_v53 = vpack.i.b16 %v4839_v45, %v4822_v43  ;;  %v4860_v18 = vcombine.high %v4789_v49, %v6161_v47 }
  0x3f   : > { %v2656_v26 = vcombine.low %v1652_v59, %v1664_v52  ;;  %v3096_v24 = vcombine.low %v2039_v44, %v2051_v23  ;;  %v4864_v29 = vcombine.high %v4792_v48, %v6161_v47  ;;  %v4868_v52 = vcombine.high %v4808_v5, %v6161_v47 }
  0x40   : > { %v2657_v8 = vcombine.low %v1676_v42, %v1688_v63  ;;  %v3097_v1 = vcombine.low %v2063_v3, %v2075_v53  ;;  %v4873_v36 = vcombine.high %v4811_v6, %v6161_v47  ;;  %v4877_v49 = vcombine.high %v4814_v20, %v6161_v47 }
  0x41   : > { %v2664_v59 = vrot.slane %v2656_v26, %v4601_v17  ;;  %v3104_v63 = vrot.slane %v3096_v24, %v4601_v17  ;;  %v4883_v42 = vcombine.high %v4825_v7, %v6161_v47  ;;  %v1655_v23 = vpack.i.b16 %v4856_v4, %v4850_v2 }
  0x42   : > { %v2671_v44 = vrot.slane %v2657_v8, %v4601_v17  ;;  %v3111_v3 = vrot.slane %v3097_v1, %v4601_v17  ;;  %v1667_v26 = vpack.i.b16 %v4864_v29, %v4860_v18  ;;  %v1679_v53 = vpack.i.b16 %v4873_v36, %v4868_v52 }
  0x43   : > { %v6162_v20 = vshrl.u32 %v4613_v27, 16  ;;  %v6163_v8 = vshrl.u32 %v4617_v30, 16  ;;  %v1691_v7 = vpack.i.b16 %v4883_v42, %v4877_v49  ;;  %v6164_v5 = vshrl.u32 %v4621_v31, 16 }
  0x44   : > { %v2672_v6 = vcombine.low %v2664_v59, %v2671_v44  ;;  %v6165_v48 = vshrl.u32 %v4625_v34, 16  ;;  %v6166_v55 = vshrl.u32 %v4629_v35, 16  ;;  %v6167_v19 = vshrl.u32 %v4633_v37, 16 }
  0x45   : > { %v1994_v24 = vpack.i.b16 %v6163_v8, %v6162_v20  ;;  %v3112_v57 = vcombine.low %v3104_v63, %v3111_v3  ;;  %v2960_v56 = vcombine.low %v1655_v23, %v1667_v26  ;;  %v6168_v27 = vshrl.u32 %v4637_v38, 16  ;;  %v4939_v8 = vld.sshfl [vmem:[%s4573_s28 + $0x142] sm:$0x33 pattern:$0x73516240] }
  0x46   : > { %v2006_v1 = vpack.i.b16 %v6165_v48, %v6164_v5  ;;  %v2018_v62 = vpack.i.b16 %v6167_v19, %v6166_v55  ;;  %v6169_v30 = vshrl.u32 %v4641_v39, 16  ;;  %v1608_v59 = vshrl.u32 %v4698_v25, 16  ;;  %2913 = vrot.lane.b32.xlu1 %v2672_v6, %s4487_s29 }
  0x47   : > { %v2961_v31 = vcombine.low %v1679_v53, %v1691_v7  ;;  %v1609_v34 = vshrl.u32 %v4702_v32, 16  ;;  %v1620_v35 = vshrl.u32 %v4706_v33, 16  ;;  %3233 = vrot.lane.b32.xlu0 %v3112_v57, %s4488_s30  ;;  %v2968_v37 = vrot.slane %v2960_v56, %v4601_v17 }
  0x48   : > { %v2030_v20 = vpack.i.b16 %v6169_v30, %v6168_v27  ;;  %v3383_v44 = vcombine.low %v1994_v24, %v2006_v1  ;;  %v1621_v38 = vshrl.u32 %v4711_v40, 16  ;;  %v1632_v39 = vshrl.u32 %v4715_v41, 16  ;;  %v4947_v30 = vld.sshfl [vmem:[%s4573_s28 + $0x14a] sm:$0x33 pattern:$0x73516240] }
  0x49   : > { %v2975_v55 = vrot.slane %v2961_v31, %v4601_v17  ;;  %v1610_v19 = vpack.i.b16 %v1609_v34, %v1608_v59  ;;  %v1633_v7 = vshrl.u32 %v4719_v46, 16  ;;  %v1644_v57 = vshrl.u32 %v4732_v61, 16  ;;  %v4953_v59 = vld.sshfl [vmem:[%s4573_s28 + $0x152] sm:$0x33 pattern:$0x73516240] }
  0x4a   : > { %v3384_v48 = vcombine.low %v2018_v62, %v2030_v20  ;;  %v3391_v25 = vrot.slane %v3383_v44, %v4601_v17  ;;  %v1622_v5 = vpack.i.b16 %v1621_v38, %v1620_v35  ;;  %v1645_v56 = vshrl.u32 %v4736_v0, 16  ;;  %v4950_v20 = vld.sshfl [vmem:[%s4573_s28 + $0x150] sm:$0x33 pattern:$0x73516240] }
  0x4b   : > { %v2976_v62 = vcombine.low %v2968_v37, %v2975_v55  ;;  %v1634_v33 = vpack.i.b16 %v1633_v7, %v1632_v39  ;;  %v2040_v40 = vshrl.u32 %v4776_v22, 16  ;;  %v2041_v41 = vshrl.u32 %v4783_v54, 16  ;;  %v4932_v54 = vld.sshfl [vmem:[%s4573_s28 + $0x140] sm:$0x33 pattern:$0x73516240] }
  0x4c   : > { %v3398_v32 = vrot.slane %v3384_v48, %v4601_v17  ;;  %v1646_v63 = vpack.i.b16 %v1645_v56, %v1644_v57  ;;  %v3247_v23 = vcombine.low %v1610_v19, %v1622_v5  ;;  %v2052_v46 = vshrl.u32 %v4796_v28, 16  ;;  %v4959_v34 = vld.sshfl [vmem:[%s4573_s28 + $0x158] sm:$0x33 pattern:$0x73516240] }
  0x4d   : > { %3217 = vrot.lane.b32.xlu1 %v2976_v62, %s4488_s30  ;;  %v2042_v3 = vpack.i.b16 %v2041_v41, %v2040_v40  ;;  %v2053_v61 = vshrl.u32 %v4800_v60, 16  ;;  %v2064_v0 = vshrl.u32 %v4804_v58, 16  ;;  %v2065_v22 = vshrl.u32 %v4818_v21, 16 }
  0x4e   : > { %v3399_v6 = vcombine.low %v3391_v25, %v3398_v32  ;;  %v3248_v26 = vcombine.low %v1634_v33, %v1646_v63  ;;  %v3255_v28 = vrot.slane %v3247_v23, %v4601_v17  ;;  %v2076_v53 = vshrl.u32 %v4822_v43, 16  ;;  %v4942_v58 = vld.sshfl [vmem:[%s4573_s28 + $0x148] sm:$0x33 pattern:$0x73516240] }
  0x4f   : > { %v2077_v60 = vshrl.u32 %v4839_v45, 16  ;;  %v2054_v21 = vpack.i.b16 %v2053_v61, %v2052_v46  ;;  %v2066_v24 = vpack.i.b16 %v2065_v22, %v2064_v0  ;;  %v1656_v1 = vshrl.u32 %v4850_v2, 16  ;;  %v4962_v35 = vld.sshfl [vmem:[%s4573_s28 + $0x15a] sm:$0x33 pattern:$0x73516240] }
  0x50   : > { %3535 = vrot.lane.b32.xlu0 %v3399_v6, %s4489_s4  ;;  %v1657_v27 = vshrl.u32 %v4856_v4, 16  ;;  %v3262_v43 = vrot.slane %v3248_v26, %v4601_v17  ;;  %v1668_v45 = vshrl.u32 %v4860_v18, 16  ;;  %v1669_v44 = vshrl.u32 %v4864_v29, 16 }
  0x51   : > { %v2078_v31 = vpack.i.b16 %v2077_v60, %v2076_v53  ;;  %v3400_v2 = vcombine.low %v2042_v3, %v2054_v21  ;;  %v1680_v37 = vshrl.u32 %v4868_v52, 16  ;;  %v1681_v48 = vshrl.u32 %v4873_v36, 16  ;;  %v4972_v32 = vld.sshfl [vmem:[%s4573_s28 + $0x40] sm:$0x33 pattern:$0x73516240] }
  0x52   : > { %v1658_v4 = vpack.i.b16 %v1657_v27, %v1656_v1  ;;  %v3263_v38 = vcombine.low %v3255_v28, %v3262_v43  ;;  %v1670_v18 = vpack.i.b16 %v1669_v44, %v1668_v45  ;;  %v1692_v29 = vshrl.u32 %v4877_v49, 16  ;;  %v4975_v5 = vld.sshfl [vmem:[%s4573_s28 + $0x42] sm:$0x33 pattern:$0x73516240] }
  0x53   : > { %v3401_v39 = vcombine.low %v2066_v24, %v2078_v31  ;;  %v3408_v55 = vrot.slane %v3400_v2, %v4601_v17  ;;  %v1682_v25 = vpack.i.b16 %v1681_v48, %v1680_v37  ;;  %v1693_v19 = vshrl.u32 %v4883_v42, 16  ;;  %6170 = vst [vmem:[#allocation28_spill] sm:$0xff] %v4975_v5  ;;  %v4978_v57 = vld.sshfl [vmem:[%s4573_s28 + $0x48] sm:$0x33 pattern:$0x73516240] }
  0x54   : > { %3519 = vrot.lane.b32.xlu1 %v3263_v38, %s4489_s4  ;;  %v3264_v7 = vcombine.low %v1658_v4, %v1670_v18  ;;  %6171 = vst [vmem:[#allocation29_spill] sm:$0xff] %v4978_v57  ;;  %v4982_v62 = vld.sshfl [vmem:[%s4573_s28 + $0x4a] sm:$0x33 pattern:$0x73516240]  ;;  %v2082_v41 = vshrl.u32 %v4932_v54, 16 }
  0x55   : > { %v3415_v52 = vrot.slane %v3401_v39, %v4601_v17  ;;  %v1694_v36 = vpack.i.b16 %v1693_v19, %v1692_v29  ;;  %6172 = vst [vmem:[#allocation30_spill] sm:$0xff] %v4982_v62  ;;  %v4985_v42 = vld.sshfl [vmem:[%s4573_s28 + $0x50] sm:$0x33 pattern:$0x73516240]  ;;  %v2083_v6 = vshrl.u32 %v4939_v8, 16  ;;  %v1175_v19 = vcombine.high %v4932_v54, %v6161_v47 }
  0x56   : > { %v3272_v56 = vrot.slane %v3264_v7, %v4601_v17  ;;  %6173 = vst [vmem:[#allocation31_spill] sm:$0xff] %v4985_v42  ;;  %v4988_v33 = vld.sshfl [vmem:[%s4573_s28 + $0x52] sm:$0x33 pattern:$0x73516240]  ;;  %v2094_v63 = vshrl.u32 %v4942_v58, 16 }
  0x57   : > { %v3416_v49 = vcombine.low %v3408_v55, %v3415_v52  ;;  %6174 = vst [vmem:[#allocation32_spill] sm:$0xff] %v4988_v33  ;;  %v3265_v40 = vcombine.low %v1682_v25, %v1694_v36  ;;  %v4994_v23 = vld.sshfl [vmem:[%s4573_s28 + $0x58] sm:$0x33 pattern:$0x73516240]  ;;  %v2095_v46 = vshrl.u32 %v4947_v30, 16  ;;  %v2084_v28 = vpack.i.b16 %v2083_v6, %v2082_v41 }
  0x58   : > { %6175 = vst [vmem:[#allocation33_spill] sm:$0xff] %v4994_v23  ;;  %v2106_v3 = vshrl.u32 %v4950_v20, 16  ;;  %v2107_v61 = vshrl.u32 %v4953_v59, 16  ;;  %v2118_v0 = vshrl.u32 %v4959_v34, 16  ;;  %v2119_v53 = vshrl.u32 %v4962_v35, 16 }
  0x59   : > { %3537 = vrot.lane.b32.xlu0 %v3416_v49, %s4489_s4  ;;  %v5002_v22 = vld.sshfl [vmem:[%s4573_s28 + $0x5a] sm:$0x33 pattern:$0x73516240]  ;;  %v3279_v26 = vrot.slane %v3265_v40, %v4601_v17  ;;  %v2096_v60 = vpack.i.b16 %v2095_v46, %v2094_v63  ;;  %v1698_v31 = vshrl.u32 %v4972_v32, 16  ;;  %v1699_v45 = vshrl.u32 %v4975_v5, 16 }
  0x5a   : > { %6176 = vst [vmem:[#allocation34_spill] sm:$0xff] %v5002_v22  ;;  %v2108_v21 = vpack.i.b16 %v2107_v61, %v2106_v3  ;;  %v2120_v1 = vpack.i.b16 %v2119_v53, %v2118_v0  ;;  %v1710_v44 = vshrl.u32 %v4978_v57, 16  ;;  %v1711_v4 = vshrl.u32 %v4982_v62, 16 }
  0x5b   : > { %v3280_v24 = vcombine.low %v3272_v56, %v3279_v26  ;;  %v2809_v27 = vcombine.low %v2084_v28, %v2096_v60  ;;  %v1722_v37 = vshrl.u32 %v4985_v42, 16  ;;  %v1723_v48 = vshrl.u32 %v4988_v33, 16 }
  0x5c   : > { %v2810_v43 = vcombine.low %v2108_v21, %v2120_v1  ;;  %v1700_v39 = vpack.i.b16 %v1699_v45, %v1698_v31  ;;  %v1734_v18 = vshrl.u32 %v4994_v23, 16  ;;  %v1735_v29 = vshrl.u32 %v5002_v22, 16 }
  0x5d   : > { %3521 = vrot.lane.b32.xlu1 %v3280_v24, %s4489_s4  ;;  %v2817_v2 = vrot.slane %v2809_v27, %v4601_v17  ;;  %v1712_v55 = vpack.i.b16 %v1711_v4, %v1710_v44  ;;  %v1724_v25 = vpack.i.b16 %v1723_v48, %v1722_v37  ;;  %v1184_v52 = vcombine.high %v4939_v8, %v6161_v47 }
  0x5e   : > { %v2824_v38 = vrot.slane %v2810_v43, %v4601_v17  ;;  %v1736_v36 = vpack.i.b16 %v1735_v29, %v1734_v18  ;;  %v1193_v49 = vcombine.high %v4942_v58, %v6161_v47  ;;  %v1202_v56 = vcombine.high %v4947_v30, %v6161_v47 }
  0x5f   : > { %v2673_v40 = vcombine.low %v1700_v39, %v1712_v55  ;;  %v1211_v41 = vcombine.high %v4950_v20, %v6161_v47  ;;  %v1220_v6 = vcombine.high %v4953_v59, %v6161_v47  ;;  %v1229_v63 = vcombine.high %v4959_v34, %v6161_v47 }
  0x60   : > { %v2825_v7 = vcombine.low %v2817_v2, %v2824_v38  ;;  %v2674_v46 = vcombine.low %v1724_v25, %v1736_v36  ;;  %v1238_v3 = vcombine.high %v4962_v35, %v6161_v47  ;;  %v2087_v61 = vpack.i.b16 %v1184_v52, %v1175_v19 }
  0x61   : > { %v2099_v0 = vpack.i.b16 %v1202_v56, %v1193_v49  ;;  %v2681_v26 = vrot.slane %v2673_v40, %v4601_v17  ;;  %v2111_v28 = vpack.i.b16 %v1220_v6, %v1211_v41  ;;  %v599_v53 = vcombine.high %v4972_v32, %v6161_v47 }
  0x62   : > { %2931 = vrot.lane.b32.xlu0 %v2825_v7, %s4487_s29  ;;  %v608_v60 = vcombine.high %v4975_v5, %v6161_v47  ;;  %v2688_v21 = vrot.slane %v2674_v46, %v4601_v17  ;;  %v2123_v24 = vpack.i.b16 %v1238_v3, %v1229_v63  ;;  %v617_v27 = vcombine.high %v4978_v57, %v6161_v47  ;;  %v5528_v57 = vld.sshfl [vmem:[%s4573_s28 + $0x1e2] sm:$0x33 pattern:$0x73516240] }
  0x63   : > { %v3113_v1 = vcombine.low %v2087_v61, %v2099_v0  ;;  %v626_v43 = vcombine.high %v4982_v62, %v6161_v47  ;;  %v635_v31 = vcombine.high %v4985_v42, %v6161_v47  ;;  %v644_v45 = vcombine.high %v4988_v33, %v6161_v47  ;;  %v5524_v62 = vld.sshfl [vmem:[%s4573_s28 + $0x1e0] sm:$0x33 pattern:$0x73516240]  ;;  %6244 = vst [vmem:[#allocation102_spill] sm:$0xff] %v5528_v57 }
  0x64   : > { %v653_v44 = vcombine.high %v4994_v23, %v6161_v47  ;;  %v2689_v2 = vcombine.low %v2681_v26, %v2688_v21  ;;  %v3114_v4 = vcombine.low %v2111_v28, %v2123_v24  ;;  %v662_v48 = vcombine.high %v5002_v22, %v6161_v47  ;;  %6243 = vst [vmem:[#allocation101_spill] sm:$0xff] %v5524_v62 }
  0x65   : > { %v3121_v37 = vrot.slane %v3113_v1, %v4601_v17  ;;  %v1703_v38 = vpack.i.b16 %v608_v60, %v599_v53  ;;  %v1715_v39 = vpack.i.b16 %v626_v43, %v617_v27  ;;  %v1727_v18 = vpack.i.b16 %v644_v45, %v635_v31  ;;  %v5059_v1 = vld.sshfl [vmem:[%s4573_s28 + $0x162] sm:$0x33 pattern:$0x73516240] }
  0x66   : > { %v2088_v29 = vshrl.u32 %v1175_v19, 16  ;;  %2915 = vrot.lane.b32.xlu1 %v2689_v2, %s4487_s29  ;;  %v3128_v55 = vrot.slane %v3114_v4, %v4601_v17  ;;  %v1739_v25 = vpack.i.b16 %v662_v48, %v653_v44  ;;  %v2089_v7 = vshrl.u32 %v1184_v52, 16  ;;  %v5056_v19 = vld.sshfl [vmem:[%s4573_s28 + $0x160] sm:$0x33 pattern:$0x73516240] }
  0x67   : > { %v2100_v36 = vshrl.u32 %v1193_v49, 16  ;;  %v2977_v40 = vcombine.low %v1703_v38, %v1715_v39  ;;  %v2101_v46 = vshrl.u32 %v1202_v56, 16  ;;  %v2112_v61 = vshrl.u32 %v1211_v41, 16  ;;  %6177 = vst [vmem:[#allocation35_spill] sm:$0xff] %v5056_v19  ;;  %6178 = vst [vmem:[#allocation36_spill] sm:$0xff] %v5059_v1 }
  0x68   : > { %v2113_v0 = vshrl.u32 %v1220_v6, 16  ;;  %v3129_v26 = vcombine.low %v3121_v37, %v3128_v55  ;;  %v2978_v28 = vcombine.low %v1727_v18, %v1739_v25  ;;  %v2090_v21 = vpack.i.b16 %v2089_v7, %v2088_v29  ;;  %v5063_v56 = vld.sshfl [vmem:[%s4573_s28 + $0x168] sm:$0x33 pattern:$0x73516240] }
  0x69   : > { %v2124_v24 = vshrl.u32 %v1229_v63, 16  ;;  %v2985_v52 = vrot.slane %v2977_v40, %v4601_v17  ;;  %v2102_v49 = vpack.i.b16 %v2101_v46, %v2100_v36  ;;  %v2125_v4 = vshrl.u32 %v1238_v3, 16  ;;  %6179 = vst [vmem:[#allocation37_spill] sm:$0xff] %v5063_v56 }
  0x6a   : > { %v2114_v2 = vpack.i.b16 %v2113_v0, %v2112_v61  ;;  %v5066_v41 = vld.sshfl [vmem:[%s4573_s28 + $0x16a] sm:$0x33 pattern:$0x73516240]  ;;  %3235 = vrot.lane.b32.xlu0 %v3129_v26, %s4488_s30  ;;  %v2992_v6 = vrot.slane %v2978_v28, %v4601_v17  ;;  %v1704_v63 = vshrl.u32 %v599_v53, 16  ;;  %v1705_v37 = vshrl.u32 %v608_v60, 16 }
  0x6b   : > { %6180 = vst [vmem:[#allocation38_spill] sm:$0xff] %v5066_v41  ;;  %v1716_v38 = vshrl.u32 %v617_v27, 16  ;;  %v5071_v39 = vld.sshfl [vmem:[%s4573_s28 + $0x170] sm:$0x33 pattern:$0x73516240]  ;;  %v2126_v3 = vpack.i.b16 %v2125_v4, %v2124_v24  ;;  %v3417_v25 = vcombine.low %v2090_v21, %v2102_v49 }
  0x6c   : > { %6181 = vst [vmem:[#allocation39_spill] sm:$0xff] %v5071_v39  ;;  %v5074_v18 = vld.sshfl [vmem:[%s4573_s28 + $0x172] sm:$0x33 pattern:$0x73516240]  ;;  %v1717_v7 = vshrl.u32 %v626_v43, 16  ;;  %v2993_v40 = vcombine.low %v2985_v52, %v2992_v6  ;;  %v1706_v53 = vpack.i.b16 %v1705_v37, %v1704_v63 }
  0x6d   : > { %6182 = vst [vmem:[#allocation40_spill] sm:$0xff] %v5074_v18  ;;  %v5077_v29 = vld.sshfl [vmem:[%s4573_s28 + $0x178] sm:$0x33 pattern:$0x73516240]  ;;  %v1728_v36 = vshrl.u32 %v635_v31, 16  ;;  %v3418_v46 = vcombine.low %v2114_v2, %v2126_v3  ;;  %v3425_v61 = vrot.slane %v3417_v25, %v4601_v17 }
  0x6e   : > { %6183 = vst [vmem:[#allocation41_spill] sm:$0xff] %v5077_v29  ;;  %v5080_v55 = vld.sshfl [vmem:[%s4573_s28 + $0x17a] sm:$0x33 pattern:$0x73516240]  ;;  %v1729_v60 = vshrl.u32 %v644_v45, 16  ;;  %v1718_v0 = vpack.i.b16 %v1717_v7, %v1716_v38  ;;  %3219 = vrot.lane.b32.xlu1 %v2993_v40, %s4488_s30 }
  0x6f   : > { %6184 = vst [vmem:[#allocation42_spill] sm:$0xff] %v5080_v55  ;;  %v1740_v27 = vshrl.u32 %v653_v44, 16  ;;  %v1741_v26 = vshrl.u32 %v662_v48, 16  ;;  %v3432_v31 = vrot.slane %v3418_v46, %v4601_v17  ;;  %v2130_v4 = vshrl.u32 %v5056_v19, 16 }
  0x70   : > { %v1730_v28 = vpack.i.b16 %v1729_v60, %v1728_v36  ;;  %v5085_v24 = vld.sshfl [vmem:[%s4573_s28 + $0x60] sm:$0x33 pattern:$0x73516240]  ;;  %v3281_v45 = vcombine.low %v1706_v53, %v1718_v0  ;;  %v2131_v37 = vshrl.u32 %v5059_v1, 16  ;;  %v2142_v38 = vshrl.u32 %v5063_v56, 16 }
  0x71   : > { %6185 = vst [vmem:[#allocation43_spill] sm:$0xff] %v5085_v24  ;;  %v5088_v43 = vld.sshfl [vmem:[%s4573_s28 + $0x62] sm:$0x33 pattern:$0x73516240]  ;;  %v1742_v21 = vpack.i.b16 %v1741_v26, %v1740_v27  ;;  %v3433_v49 = vcombine.low %v3425_v61, %v3432_v31  ;;  %v2143_v3 = vshrl.u32 %v5066_v41, 16 }
  0x72   : > { %6186 = vst [vmem:[#allocation44_spill] sm:$0xff] %v5088_v43  ;;  %v5092_v44 = vld.sshfl [vmem:[%s4573_s28 + $0x68] sm:$0x33 pattern:$0x73516240]  ;;  %v3289_v48 = vrot.slane %v3281_v45, %v4601_v17  ;;  %v2154_v25 = vshrl.u32 %v5071_v39, 16  ;;  %v2132_v46 = vpack.i.b16 %v2131_v37, %v2130_v4 }
  0x73   : > { %6187 = vst [vmem:[#allocation45_spill] sm:$0xff] %v5092_v44  ;;  %v5095_v52 = vld.sshfl [vmem:[%s4573_s28 + $0x6a] sm:$0x33 pattern:$0x73516240]  ;;  %v3282_v2 = vcombine.low %v1730_v28, %v1742_v21  ;;  %3539 = vrot.lane.b32.xlu0 %v3433_v49, %s4489_s4  ;;  %v2155_v40 = vshrl.u32 %v5074_v18, 16  ;;  %v2144_v61 = vpack.i.b16 %v2143_v3, %v2142_v38 }
  0x74   : > { %6188 = vst [vmem:[#allocation46_spill] sm:$0xff] %v5095_v52  ;;  %v5100_v6 = vld.sshfl [vmem:[%s4573_s28 + $0x70] sm:$0x33 pattern:$0x73516240]  ;;  %v2166_v53 = vshrl.u32 %v5077_v29, 16 }
  0x75   : > { %6189 = vst [vmem:[#allocation47_spill] sm:$0xff] %v5100_v6  ;;  %v5103_v63 = vld.sshfl [vmem:[%s4573_s28 + $0x72] sm:$0x33 pattern:$0x73516240]  ;;  %v3296_v36 = vrot.slane %v3282_v2, %v4601_v17  ;;  %v2167_v60 = vshrl.u32 %v5080_v55, 16  ;;  %v2156_v26 = vpack.i.b16 %v2155_v40, %v2154_v25  ;;  %v2826_v31 = vcombine.low %v2132_v46, %v2144_v61 }
  0x76   : > { %6190 = vst [vmem:[#allocation48_spill] sm:$0xff] %v5103_v63  ;;  %v5110_v7 = vld.sshfl [vmem:[%s4573_s28 + $0x78] sm:$0x33 pattern:$0x73516240]  ;;  %v1746_v45 = vshrl.u32 %v5085_v24, 16  ;;  %v1247_v40 = vcombine.high %v5056_v19, %v6161_v47  ;;  %v1256_v46 = vcombine.high %v5059_v1, %v6161_v47  ;;  %v1265_v61 = vcombine.high %v5063_v56, %v6161_v47 }
  0x77   : > { %6191 = vst [vmem:[#allocation49_spill] sm:$0xff] %v5110_v7  ;;  %v5118_v27 = vld.sshfl [vmem:[%s4573_s28 + $0x7a] sm:$0x33 pattern:$0x73516240]  ;;  %v3297_v0 = vcombine.low %v3289_v48, %v3296_v36  ;;  %v2168_v28 = vpack.i.b16 %v2167_v60, %v2166_v53  ;;  %v2834_v49 = vrot.slane %v2826_v31, %v4601_v17  ;;  %v1747_v2 = vshrl.u32 %v5088_v43, 16 }
  0x78   : > { %6192 = vst [vmem:[#allocation50_spill] sm:$0xff] %v5118_v27  ;;  %v1758_v22 = vshrl.u32 %v5092_v44, 16  ;;  %v1759_v23 = vshrl.u32 %v5095_v52, 16  ;;  %v1770_v48 = vshrl.u32 %v5100_v6, 16  ;;  %v1771_v37 = vshrl.u32 %v5103_v63, 16 }
  0x79   : > { %3523 = vrot.lane.b32.xlu1 %v3297_v0, %s4489_s4  ;;  %v2827_v21 = vcombine.low %v2156_v26, %v2168_v28  ;;  %v1782_v38 = vshrl.u32 %v5110_v7, 16  ;;  %v1748_v3 = vpack.i.b16 %v1747_v2, %v1746_v45  ;;  %v1783_v36 = vshrl.u32 %v5118_v27, 16  ;;  %v5171_v1 = vld.sshfl [vmem:[%s4573_s28 + $0x180] sm:$0x33 pattern:$0x73516240] }
  0x7a   : > { %v1760_v25 = vpack.i.b16 %v1759_v23, %v1758_v22  ;;  %v1772_v60 = vpack.i.b16 %v1771_v37, %v1770_v48  ;;  %v1274_v28 = vcombine.high %v5066_v41, %v6161_v47  ;;  %v1283_v23 = vcombine.high %v5071_v39, %v6161_v47  ;;  %6193 = vst [vmem:[#allocation51_spill] sm:$0xff] %v5171_v1 }
  0x7b   : > { %v2841_v4 = vrot.slane %v2827_v21, %v4601_v17  ;;  %v1784_v0 = vpack.i.b16 %v1783_v36, %v1782_v38  ;;  %v1292_v22 = vcombine.high %v5074_v18, %v6161_v47  ;;  %v1301_v31 = vcombine.high %v5077_v29, %v6161_v47 }
  0x7c   : > { %v2690_v26 = vcombine.low %v1748_v3, %v1760_v25  ;;  %v1310_v21 = vcombine.high %v5080_v55, %v6161_v47  ;;  %v2135_v45 = vpack.i.b16 %v1256_v46, %v1247_v40  ;;  %v671_v48 = vcombine.high %v5085_v24, %v6161_v47 }
  0x7d   : > { %v2842_v53 = vcombine.low %v2834_v49, %v2841_v4  ;;  %v2691_v49 = vcombine.low %v1772_v60, %v1784_v0  ;;  %v2147_v4 = vpack.i.b16 %v1274_v28, %v1265_v61  ;;  %v2159_v37 = vpack.i.b16 %v1292_v22, %v1283_v23 }
  0x7e   : > { %v2698_v2 = vrot.slane %v2690_v26, %v4601_v17  ;;  %v2171_v38 = vpack.i.b16 %v1310_v21, %v1301_v31  ;;  %v680_v3 = vcombine.high %v5088_v43, %v6161_v47  ;;  %v689_v25 = vcombine.high %v5092_v44, %v6161_v47 }
  0x7f   : > { %2933 = vrot.lane.b32.xlu0 %v2842_v53, %s4487_s29  ;;  %v2705_v36 = vrot.slane %v2691_v49, %v4601_v17  ;;  %v3130_v53 = vcombine.low %v2135_v45, %v2147_v4  ;;  %v698_v60 = vcombine.high %v5095_v52, %v6161_v47  ;;  %v707_v0 = vcombine.high %v5100_v6, %v6161_v47 }
  0x80   : > { %v3131_v26 = vcombine.low %v2159_v37, %v2171_v38  ;;  %v716_v24 = vcombine.high %v5103_v63, %v6161_v47  ;;  %v725_v55 = vcombine.high %v5110_v7, %v6161_v47  ;;  %v734_v43 = vcombine.high %v5118_v27, %v6161_v47 }
  0x81   : > { %v2706_v44 = vcombine.low %v2698_v2, %v2705_v36  ;;  %v3138_v49 = vrot.slane %v3130_v53, %v4601_v17  ;;  %v1751_v45 = vpack.i.b16 %v680_v3, %v671_v48  ;;  %v1763_v4 = vpack.i.b16 %v698_v60, %v689_v25 }
  0x82   : > { %v3145_v52 = vrot.slane %v3131_v26, %v4601_v17  ;;  %v1775_v29 = vpack.i.b16 %v716_v24, %v707_v0  ;;  %v1787_v6 = vpack.i.b16 %v734_v43, %v725_v55  ;;  %v2136_v37 = vshrl.u32 %v1247_v40, 16  ;;  %v5174_v40 = vld.sshfl [vmem:[%s4573_s28 + $0x182] sm:$0x33 pattern:$0x73516240] }
  0x83   : > { %2917 = vrot.lane.b32.xlu1 %v2706_v44, %s4487_s29  ;;  %v2994_v38 = vcombine.low %v1751_v45, %v1763_v4  ;;  %v2137_v63 = vshrl.u32 %v1256_v46, 16  ;;  %v2148_v7 = vshrl.u32 %v1265_v61, 16  ;;  %v2149_v18 = vshrl.u32 %v1274_v28, 16  ;;  %6194 = vst [vmem:[#allocation52_spill] sm:$0xff] %v5174_v40 }
  0x84   : > { %v3146_v27 = vcombine.low %v3138_v49, %v3145_v52  ;;  %v2995_v2 = vcombine.low %v1775_v29, %v1787_v6  ;;  %v2160_v36 = vshrl.u32 %v1283_v23, 16  ;;  %v2161_v53 = vshrl.u32 %v1292_v22, 16  ;;  %v5179_v46 = vld.sshfl [vmem:[%s4573_s28 + $0x188] sm:$0x33 pattern:$0x73516240] }
  0x85   : > { %v3002_v39 = vrot.slane %v2994_v38, %v4601_v17  ;;  %v2138_v26 = vpack.i.b16 %v2137_v63, %v2136_v37  ;;  %v2150_v41 = vpack.i.b16 %v2149_v18, %v2148_v7  ;;  %v2172_v56 = vshrl.u32 %v1301_v31, 16  ;;  %6195 = vst [vmem:[#allocation53_spill] sm:$0xff] %v5179_v46  ;;  %v5182_v61 = vld.sshfl [vmem:[%s4573_s28 + $0x18a] sm:$0x33 pattern:$0x73516240] }
  0x86   : > { %3237 = vrot.lane.b32.xlu0 %v3146_v27, %s4488_s30  ;;  %v3009_v44 = vrot.slane %v2995_v2, %v4601_v17  ;;  %v2162_v52 = vpack.i.b16 %v2161_v53, %v2160_v36  ;;  %v2173_v29 = vshrl.u32 %v1310_v21, 16  ;;  %v1752_v6 = vshrl.u32 %v671_v48, 16  ;;  %6196 = vst [vmem:[#allocation54_spill] sm:$0xff] %v5182_v61 }
  0x87   : > { %v3434_v18 = vcombine.low %v2138_v26, %v2150_v41  ;;  %v1753_v63 = vshrl.u32 %v680_v3, 16  ;;  %v1764_v7 = vshrl.u32 %v689_v25, 16  ;;  %v1765_v28 = vshrl.u32 %v698_v60, 16 }
  0x88   : > { %v5185_v23 = vld.sshfl [vmem:[%s4573_s28 + $0x190] sm:$0x33 pattern:$0x73516240]  ;;  %v3010_v27 = vcombine.low %v3002_v39, %v3009_v44  ;;  %v2174_v22 = vpack.i.b16 %v2173_v29, %v2172_v56  ;;  %v1776_v31 = vshrl.u32 %v707_v0, 16  ;;  %v1777_v49 = vshrl.u32 %v716_v24, 16 }
  0x89   : > { %6197 = vst [vmem:[#allocation55_spill] sm:$0xff] %v5185_v23  ;;  %v5188_v21 = vld.sshfl [vmem:[%s4573_s28 + $0x192] sm:$0x33 pattern:$0x73516240]  ;;  %v3442_v45 = vrot.slane %v3434_v18, %v4601_v17  ;;  %v1754_v41 = vpack.i.b16 %v1753_v63, %v1752_v6  ;;  %v1766_v3 = vpack.i.b16 %v1765_v28, %v1764_v7  ;;  %v1788_v25 = vshrl.u32 %v725_v55, 16 }
  0x8a   : > { %6198 = vst [vmem:[#allocation56_spill] sm:$0xff] %v5188_v21  ;;  %v5191_v48 = vld.sshfl [vmem:[%s4573_s28 + $0x198] sm:$0x33 pattern:$0x73516240]  ;;  %3221 = vrot.lane.b32.xlu1 %v3010_v27, %s4488_s30  ;;  %v3435_v56 = vcombine.low %v2162_v52, %v2174_v22  ;;  %v1778_v39 = vpack.i.b16 %v1777_v49, %v1776_v31  ;;  %v1789_v24 = vshrl.u32 %v734_v43, 16 }
  0x8b   : > { %6199 = vst [vmem:[#allocation57_spill] sm:$0xff] %v5191_v48  ;;  %v5195_v60 = vld.sshfl [vmem:[%s4573_s28 + $0x19a] sm:$0x33 pattern:$0x73516240]  ;;  %v3298_v4 = vcombine.low %v1754_v41, %v1766_v3  ;;  %v2178_v44 = vshrl.u32 %v5171_v1, 16 }
  0x8c   : > { %6200 = vst [vmem:[#allocation58_spill] sm:$0xff] %v5195_v60  ;;  %v5199_v0 = vld.sshfl [vmem:[%s4573_s28 + $0x80] sm:$0x33 pattern:$0x73516240]  ;;  %v3449_v2 = vrot.slane %v3435_v56, %v4601_v17  ;;  %v1790_v55 = vpack.i.b16 %v1789_v24, %v1788_v25  ;;  %v2179_v63 = vshrl.u32 %v5174_v40, 16 }
  0x8d   : > { %6201 = vst [vmem:[#allocation59_spill] sm:$0xff] %v5199_v0  ;;  %v5202_v37 = vld.sshfl [vmem:[%s4573_s28 + $0x82] sm:$0x33 pattern:$0x73516240]  ;;  %v3306_v26 = vrot.slane %v3298_v4, %v4601_v17  ;;  %v2190_v7 = vshrl.u32 %v5179_v46, 16 }
  0x8e   : > { %6202 = vst [vmem:[#allocation60_spill] sm:$0xff] %v5202_v37  ;;  %v5205_v38 = vld.sshfl [vmem:[%s4573_s28 + $0x88] sm:$0x33 pattern:$0x73516240]  ;;  %v3450_v6 = vcombine.low %v3442_v45, %v3449_v2  ;;  %v3299_v18 = vcombine.low %v1778_v39, %v1790_v55  ;;  %v2191_v28 = vshrl.u32 %v5182_v61, 16  ;;  %v2180_v41 = vpack.i.b16 %v2179_v63, %v2178_v44 }
  0x8f   : > { %6203 = vst [vmem:[#allocation61_spill] sm:$0xff] %v5205_v38  ;;  %v5209_v36 = vld.sshfl [vmem:[%s4573_s28 + $0x8a] sm:$0x33 pattern:$0x73516240]  ;;  %v2202_v27 = vshrl.u32 %v5185_v23, 16 }
  0x90   : > { %6204 = vst [vmem:[#allocation62_spill] sm:$0xff] %v5209_v36  ;;  %v5212_v53 = vld.sshfl [vmem:[%s4573_s28 + $0x90] sm:$0x33 pattern:$0x73516240]  ;;  %v2203_v22 = vshrl.u32 %v5188_v21, 16  ;;  %3541 = vrot.lane.b32.xlu0 %v3450_v6, %s4489_s4  ;;  %v3313_v49 = vrot.slane %v3299_v18, %v4601_v17  ;;  %v2192_v3 = vpack.i.b16 %v2191_v28, %v2190_v7 }
  0x91   : > { %6205 = vst [vmem:[#allocation63_spill] sm:$0xff] %v5212_v53  ;;  %v5217_v52 = vld.sshfl [vmem:[%s4573_s28 + $0x92] sm:$0x33 pattern:$0x73516240]  ;;  %v2214_v31 = vshrl.u32 %v5191_v48, 16 }
  0x92   : > { %6206 = vst [vmem:[#allocation64_spill] sm:$0xff] %v5217_v52  ;;  %v5220_v43 = vld.sshfl [vmem:[%s4573_s28 + $0x98] sm:$0x33 pattern:$0x73516240]  ;;  %v2215_v45 = vshrl.u32 %v5195_v60, 16  ;;  %v2204_v25 = vpack.i.b16 %v2203_v22, %v2202_v27  ;;  %v3314_v56 = vcombine.low %v3306_v26, %v3313_v49  ;;  %v2843_v24 = vcombine.low %v2180_v41, %v2192_v3 }
  0x93   : > { %6207 = vst [vmem:[#allocation65_spill] sm:$0xff] %v5220_v43  ;;  %v5223_v29 = vld.sshfl [vmem:[%s4573_s28 + $0x9a] sm:$0x33 pattern:$0x73516240]  ;;  %v1794_v2 = vshrl.u32 %v5199_v0, 16  ;;  %v1319_v49 = vcombine.high %v5171_v1, %v6161_v47  ;;  %v1328_v41 = vcombine.high %v5174_v40, %v6161_v47 }
  0x94   : > { %6208 = vst [vmem:[#allocation66_spill] sm:$0xff] %v5223_v29  ;;  %v2216_v39 = vpack.i.b16 %v2215_v45, %v2214_v31  ;;  %3525 = vrot.lane.b32.xlu1 %v3314_v56, %s4489_s4  ;;  %v1795_v55 = vshrl.u32 %v5202_v37, 16  ;;  %v1806_v19 = vshrl.u32 %v5205_v38, 16  ;;  %v2851_v6 = vrot.slane %v2843_v24, %v4601_v17 }
  0x95   : > { %v1807_v44 = vshrl.u32 %v5209_v36, 16  ;;  %v1818_v18 = vshrl.u32 %v5212_v53, 16  ;;  %v1819_v63 = vshrl.u32 %v5217_v52, 16  ;;  %v1830_v28 = vshrl.u32 %v5220_v43, 16 }
  0x96   : > { %v2844_v4 = vcombine.low %v2204_v25, %v2216_v39  ;;  %v1796_v7 = vpack.i.b16 %v1795_v55, %v1794_v2  ;;  %v1831_v27 = vshrl.u32 %v5223_v29, 16  ;;  %v1337_v25 = vcombine.high %v5179_v46, %v6161_v47  ;;  %v5284_v46 = vld.sshfl [vmem:[%s4573_s28 + $0x1a0] sm:$0x33 pattern:$0x73516240] }
  0x97   : > { %v1808_v22 = vpack.i.b16 %v1807_v44, %v1806_v19  ;;  %v1820_v31 = vpack.i.b16 %v1819_v63, %v1818_v18  ;;  %v1346_v56 = vcombine.high %v5182_v61, %v6161_v47  ;;  %v1355_v24 = vcombine.high %v5185_v23, %v6161_v47  ;;  %6209 = vst [vmem:[#allocation67_spill] sm:$0xff] %v5284_v46 }
  0x98   : > { %v2858_v26 = vrot.slane %v2844_v4, %v4601_v17  ;;  %v1832_v3 = vpack.i.b16 %v1831_v27, %v1830_v28  ;;  %v1364_v19 = vcombine.high %v5188_v21, %v6161_v47  ;;  %v1373_v4 = vcombine.high %v5191_v48, %v6161_v47 }
  0x99   : > { %v2707_v39 = vcombine.low %v1796_v7, %v1808_v22  ;;  %v1382_v55 = vcombine.high %v5195_v60, %v6161_v47  ;;  %v2195_v44 = vpack.i.b16 %v1346_v56, %v1337_v25  ;;  %v752_v7 = vcombine.high %v5202_v37, %v6161_v47 }
  0x9a   : > { %v2859_v45 = vcombine.low %v2851_v6, %v2858_v26  ;;  %v2708_v2 = vcombine.low %v1820_v31, %v1832_v3  ;;  %v2183_v6 = vpack.i.b16 %v1328_v41, %v1319_v49  ;;  %v2207_v63 = vpack.i.b16 %v1364_v19, %v1355_v24 }
  0x9b   : > { %v2715_v18 = vrot.slane %v2707_v39, %v4601_v17  ;;  %v743_v26 = vcombine.high %v5199_v0, %v6161_v47  ;;  %v2219_v27 = vpack.i.b16 %v1382_v55, %v1373_v4  ;;  %v761_v31 = vcombine.high %v5205_v38, %v6161_v47 }
  0x9c   : > { %2935 = vrot.lane.b32.xlu0 %v2859_v45, %s4487_s29  ;;  %v2722_v28 = vrot.slane %v2708_v2, %v4601_v17  ;;  %v3147_v22 = vcombine.low %v2183_v6, %v2195_v44  ;;  %v770_v45 = vcombine.high %v5209_v36, %v6161_v47  ;;  %v779_v3 = vcombine.high %v5212_v53, %v6161_v47 }
  0x9d   : > { %v788_v39 = vcombine.high %v5217_v52, %v6161_v47  ;;  %v797_v0 = vcombine.high %v5220_v43, %v6161_v47  ;;  %v3148_v60 = vcombine.low %v2207_v63, %v2219_v27  ;;  %v806_v6 = vcombine.high %v5223_v29, %v6161_v47 }
  0x9e   : > { %v2723_v37 = vcombine.low %v2715_v18, %v2722_v28  ;;  %v3155_v2 = vrot.slane %v3147_v22, %v4601_v17  ;;  %v1799_v44 = vpack.i.b16 %v752_v7, %v743_v26  ;;  %v1811_v38 = vpack.i.b16 %v770_v45, %v761_v31 }
  0x9f   : > { %v1823_v36 = vpack.i.b16 %v788_v39, %v779_v3  ;;  %v2184_v48 = vshrl.u32 %v1319_v49, 16  ;;  %v3162_v52 = vrot.slane %v3148_v60, %v4601_v17  ;;  %v1835_v53 = vpack.i.b16 %v806_v6, %v797_v0  ;;  %v5287_v49 = vld.sshfl [vmem:[%s4573_s28 + $0x1a2] sm:$0x33 pattern:$0x73516240] }
  0xa0   : > { %2919 = vrot.lane.b32.xlu1 %v2723_v37, %s4487_s29  ;;  %v2185_v43 = vshrl.u32 %v1328_v41, 16  ;;  %v2196_v18 = vshrl.u32 %v1337_v25, 16  ;;  %v3011_v63 = vcombine.low %v1799_v44, %v1811_v38  ;;  %v2197_v28 = vshrl.u32 %v1346_v56, 16  ;;  %6210 = vst [vmem:[#allocation68_spill] sm:$0xff] %v5287_v49 }
  0xa1   : > { %v2208_v27 = vshrl.u32 %v1355_v24, 16  ;;  %v2209_v22 = vshrl.u32 %v1364_v19, 16  ;;  %v3163_v29 = vcombine.low %v3155_v2, %v3162_v52  ;;  %v3012_v21 = vcombine.low %v1823_v36, %v1835_v53  ;;  %v5290_v37 = vld.sshfl [vmem:[%s4573_s28 + $0x1a8] sm:$0x33 pattern:$0x73516240] }
  0xa2   : > { %v2186_v23 = vpack.i.b16 %v2185_v43, %v2184_v48  ;;  %v2220_v61 = vshrl.u32 %v1373_v4, 16  ;;  %6211 = vst [vmem:[#allocation69_spill] sm:$0xff] %v5290_v37  ;;  %v3019_v60 = vrot.slane %v3011_v63, %v4601_v17  ;;  %v2198_v41 = vpack.i.b16 %v2197_v28, %v2196_v18  ;;  %v5294_v56 = vld.sshfl [vmem:[%s4573_s28 + $0x1aa] sm:$0x33 pattern:$0x73516240] }
  0xa3   : > { %v2210_v25 = vpack.i.b16 %v2209_v22, %v2208_v27  ;;  %v2221_v38 = vshrl.u32 %v1382_v55, 16  ;;  %6212 = vst [vmem:[#allocation70_spill] sm:$0xff] %v5294_v56  ;;  %3239 = vrot.lane.b32.xlu0 %v3163_v29, %s4488_s30  ;;  %v3026_v48 = vrot.slane %v3012_v21, %v4601_v17  ;;  %v1800_v36 = vshrl.u32 %v743_v26, 16 }
  0xa4   : > { %v1801_v53 = vshrl.u32 %v752_v7, 16  ;;  %v1812_v52 = vshrl.u32 %v761_v31, 16  ;;  %v5299_v43 = vld.sshfl [vmem:[%s4573_s28 + $0x1b0] sm:$0x33 pattern:$0x73516240]  ;;  %v3451_v19 = vcombine.low %v2186_v23, %v2198_v41 }
  0xa5   : > { %6213 = vst [vmem:[#allocation71_spill] sm:$0xff] %v5299_v43  ;;  %v2222_v24 = vpack.i.b16 %v2221_v38, %v2220_v61  ;;  %v1813_v4 = vshrl.u32 %v770_v45, 16  ;;  %v1824_v2 = vshrl.u32 %v779_v3, 16  ;;  %v3027_v44 = vcombine.low %v3019_v60, %v3026_v48 }
  0xa6   : > { %v5302_v55 = vld.sshfl [vmem:[%s4573_s28 + $0x1b2] sm:$0x33 pattern:$0x73516240]  ;;  %v1802_v18 = vpack.i.b16 %v1801_v53, %v1800_v36  ;;  %v1825_v29 = vshrl.u32 %v788_v39, 16  ;;  %v1836_v63 = vshrl.u32 %v797_v0, 16  ;;  %v3459_v23 = vrot.slane %v3451_v19, %v4601_v17 }
  0xa7   : > { %6214 = vst [vmem:[#allocation72_spill] sm:$0xff] %v5302_v55  ;;  %v5305_v21 = vld.sshfl [vmem:[%s4573_s28 + $0x1b8] sm:$0x33 pattern:$0x73516240]  ;;  %v3452_v61 = vcombine.low %v2210_v25, %v2222_v24  ;;  %v1814_v7 = vpack.i.b16 %v1813_v4, %v1812_v52  ;;  %v1837_v31 = vshrl.u32 %v806_v6, 16  ;;  %3223 = vrot.lane.b32.xlu1 %v3027_v44, %s4488_s30 }
  0xa8   : > { %6215 = vst [vmem:[#allocation73_spill] sm:$0xff] %v5305_v21  ;;  %v5308_v26 = vld.sshfl [vmem:[%s4573_s28 + $0x1ba] sm:$0x33 pattern:$0x73516240]  ;;  %v1826_v45 = vpack.i.b16 %v1825_v29, %v1824_v2  ;;  %v2226_v36 = vshrl.u32 %v5284_v46, 16 }
  0xa9   : > { %6216 = vst [vmem:[#allocation74_spill] sm:$0xff] %v5308_v26  ;;  %v5313_v3 = vld.sshfl [vmem:[%s4573_s28 + $0xa0] sm:$0x33 pattern:$0x73516240]  ;;  %v3466_v0 = vrot.slane %v3452_v61, %v4601_v17  ;;  %v1838_v28 = vpack.i.b16 %v1837_v31, %v1836_v63  ;;  %v3315_v27 = vcombine.low %v1802_v18, %v1814_v7  ;;  %v2227_v24 = vshrl.u32 %v5287_v49, 16 }
  0xaa   : > { %6217 = vst [vmem:[#allocation75_spill] sm:$0xff] %v5313_v3  ;;  %v5316_v39 = vld.sshfl [vmem:[%s4573_s28 + $0xa2] sm:$0x33 pattern:$0x73516240]  ;;  %v2238_v19 = vshrl.u32 %v5290_v37, 16 }
  0xab   : > { %6218 = vst [vmem:[#allocation76_spill] sm:$0xff] %v5316_v39  ;;  %v5320_v22 = vld.sshfl [vmem:[%s4573_s28 + $0xa8] sm:$0x33 pattern:$0x73516240]  ;;  %v3467_v25 = vcombine.low %v3459_v23, %v3466_v0  ;;  %v3316_v38 = vcombine.low %v1826_v45, %v1838_v28  ;;  %v3323_v48 = vrot.slane %v3315_v27, %v4601_v17  ;;  %v2239_v4 = vshrl.u32 %v5294_v56, 16 }
  0xac   : > { %6219 = vst [vmem:[#allocation77_spill] sm:$0xff] %v5320_v22  ;;  %v5323_v60 = vld.sshfl [vmem:[%s4573_s28 + $0xaa] sm:$0x33 pattern:$0x73516240]  ;;  %v2250_v2 = vshrl.u32 %v5299_v43, 16  ;;  %v2228_v61 = vpack.i.b16 %v2227_v24, %v2226_v36 }
  0xad   : > { %6220 = vst [vmem:[#allocation78_spill] sm:$0xff] %v5323_v60  ;;  %v5326_v41 = vld.sshfl [vmem:[%s4573_s28 + $0xb0] sm:$0x33 pattern:$0x73516240]  ;;  %3543 = vrot.lane.b32.xlu0 %v3467_v25, %s4489_s4  ;;  %v3330_v44 = vrot.slane %v3316_v38, %v4601_v17  ;;  %v2251_v18 = vshrl.u32 %v5302_v55, 16  ;;  %v2240_v23 = vpack.i.b16 %v2239_v4, %v2238_v19 }
  0xae   : > { %6221 = vst [vmem:[#allocation79_spill] sm:$0xff] %v5326_v41  ;;  %v5329_v6 = vld.sshfl [vmem:[%s4573_s28 + $0xb2] sm:$0x33 pattern:$0x73516240]  ;;  %v2262_v29 = vshrl.u32 %v5305_v21, 16 }
  0xaf   : > { %6222 = vst [vmem:[#allocation80_spill] sm:$0xff] %v5329_v6  ;;  %v5334_v53 = vld.sshfl [vmem:[%s4573_s28 + $0xb8] sm:$0x33 pattern:$0x73516240]  ;;  %v2263_v63 = vshrl.u32 %v5308_v26, 16  ;;  %v3331_v7 = vcombine.low %v3323_v48, %v3330_v44  ;;  %v2252_v31 = vpack.i.b16 %v2251_v18, %v2250_v2  ;;  %v2860_v0 = vcombine.low %v2228_v61, %v2240_v23 }
  0xb0   : > { %6223 = vst [vmem:[#allocation81_spill] sm:$0xff] %v5334_v53  ;;  %v5337_v52 = vld.sshfl [vmem:[%s4573_s28 + $0xba] sm:$0x33 pattern:$0x73516240]  ;;  %v1842_v27 = vshrl.u32 %v5313_v3, 16  ;;  %v1391_v18 = vcombine.high %v5284_v46, %v6161_v47  ;;  %v1400_v61 = vcombine.high %v5287_v49, %v6161_v47  ;;  %v1409_v23 = vcombine.high %v5290_v37, %v6161_v47 }
  0xb1   : > { %6224 = vst [vmem:[#allocation82_spill] sm:$0xff] %v5337_v52  ;;  %v2264_v45 = vpack.i.b16 %v2263_v63, %v2262_v29  ;;  %3527 = vrot.lane.b32.xlu1 %v3331_v7, %s4489_s4  ;;  %v2868_v25 = vrot.slane %v2860_v0, %v4601_v17  ;;  %v1843_v38 = vshrl.u32 %v5316_v39, 16  ;;  %v1854_v40 = vshrl.u32 %v5320_v22, 16 }
  0xb2   : > { %v1855_v1 = vshrl.u32 %v5323_v60, 16  ;;  %v1866_v48 = vshrl.u32 %v5326_v41, 16  ;;  %v1867_v24 = vshrl.u32 %v5329_v6, 16  ;;  %v1878_v19 = vshrl.u32 %v5334_v53, 16 }
  0xb3   : > { %v2861_v28 = vcombine.low %v2252_v31, %v2264_v45  ;;  %v1844_v4 = vpack.i.b16 %v1843_v38, %v1842_v27  ;;  %v1879_v44 = vshrl.u32 %v5337_v52, 16  ;;  %v1418_v45 = vcombine.high %v5294_v56, %v6161_v47  ;;  %v5399_v49 = vld.sshfl [vmem:[%s4573_s28 + $0x1c0] sm:$0x33 pattern:$0x73516240] }
  0xb4   : > { %v1856_v2 = vpack.i.b16 %v1855_v1, %v1854_v40  ;;  %v1868_v63 = vpack.i.b16 %v1867_v24, %v1866_v48  ;;  %v1427_v1 = vcombine.high %v5299_v43, %v6161_v47  ;;  %v1436_v40 = vcombine.high %v5302_v55, %v6161_v47  ;;  %6225 = vst [vmem:[#allocation83_spill] sm:$0xff] %v5399_v49 }
  0xb5   : > { %v2875_v36 = vrot.slane %v2861_v28, %v4601_v17  ;;  %v1880_v7 = vpack.i.b16 %v1879_v44, %v1878_v19  ;;  %v1445_v0 = vcombine.high %v5305_v21, %v6161_v47  ;;  %v1454_v28 = vcombine.high %v5308_v26, %v6161_v47 }
  0xb6   : > { %v2724_v31 = vcombine.low %v1844_v4, %v1856_v2  ;;  %v2231_v27 = vpack.i.b16 %v1400_v61, %v1391_v18  ;;  %v815_v48 = vcombine.high %v5313_v3, %v6161_v47  ;;  %v2255_v24 = vpack.i.b16 %v1436_v40, %v1427_v1 }
  0xb7   : > { %v2876_v29 = vcombine.low %v2868_v25, %v2875_v36  ;;  %v2725_v25 = vcombine.low %v1868_v63, %v1880_v7  ;;  %v2243_v36 = vpack.i.b16 %v1418_v45, %v1409_v23  ;;  %v2267_v19 = vpack.i.b16 %v1454_v28, %v1445_v0 }
  0xb8   : > { %v2732_v38 = vrot.slane %v2724_v31, %v4601_v17  ;;  %v824_v4 = vcombine.high %v5316_v39, %v6161_v47  ;;  %v833_v2 = vcombine.high %v5320_v22, %v6161_v47  ;;  %v842_v63 = vcombine.high %v5323_v60, %v6161_v47 }
  0xb9   : > { %2937 = vrot.lane.b32.xlu0 %v2876_v29, %s4487_s29  ;;  %v2739_v44 = vrot.slane %v2725_v25, %v4601_v17  ;;  %v3164_v29 = vcombine.low %v2231_v27, %v2243_v36  ;;  %v851_v7 = vcombine.high %v5326_v41, %v6161_v47  ;;  %v3165_v31 = vcombine.low %v2255_v24, %v2267_v19 }
  0xba   : > { %v860_v3 = vcombine.high %v5329_v6, %v6161_v47  ;;  %v869_v26 = vcombine.high %v5334_v53, %v6161_v47  ;;  %v878_v39 = vcombine.high %v5337_v52, %v6161_v47  ;;  %v1847_v27 = vpack.i.b16 %v824_v4, %v815_v48 }
  0xbb   : > { %v2740_v22 = vcombine.low %v2732_v38, %v2739_v44  ;;  %v3172_v25 = vrot.slane %v3164_v29, %v4601_v17  ;;  %v1859_v36 = vpack.i.b16 %v842_v63, %v833_v2  ;;  %v3179_v60 = vrot.slane %v3165_v31, %v4601_v17 }
  0xbc   : > { %v1871_v21 = vpack.i.b16 %v860_v3, %v851_v7  ;;  %v1883_v41 = vpack.i.b16 %v878_v39, %v869_v26  ;;  %v2232_v24 = vshrl.u32 %v1391_v18, 16  ;;  %v2233_v6 = vshrl.u32 %v1400_v61, 16 }
  0xbd   : > { %2921 = vrot.lane.b32.xlu1 %v2740_v22, %s4487_s29  ;;  %v3028_v19 = vcombine.low %v1847_v27, %v1859_v36  ;;  %v2244_v55 = vshrl.u32 %v1409_v23, 16  ;;  %v2245_v53 = vshrl.u32 %v1418_v45, 16  ;;  %v3180_v52 = vcombine.low %v3172_v25, %v3179_v60  ;;  %v5410_v45 = vld.sshfl [vmem:[%s4573_s28 + $0x1ca] sm:$0x33 pattern:$0x73516240] }
  0xbe   : > { %v3029_v38 = vcombine.low %v1871_v21, %v1883_v41  ;;  %v2256_v44 = vshrl.u32 %v1427_v1, 16  ;;  %v2257_v29 = vshrl.u32 %v1436_v40, 16  ;;  %v2234_v31 = vpack.i.b16 %v2233_v6, %v2232_v24  ;;  %v5404_v21 = vld.sshfl [vmem:[%s4573_s28 + $0x1c2] sm:$0x33 pattern:$0x73516240] }
  0xbf   : > { %v3036_v43 = vrot.slane %v3028_v19, %v4601_v17  ;;  %v2246_v56 = vpack.i.b16 %v2245_v53, %v2244_v55  ;;  %v2268_v37 = vshrl.u32 %v1445_v0, 16  ;;  %3241 = vrot.lane.b32.xlu0 %v3180_v52, %s4488_s30  ;;  %v2269_v61 = vshrl.u32 %v1454_v28, 16  ;;  %6226 = vst [vmem:[#allocation84_spill] sm:$0xff] %v5404_v21  ;;  %6228 = vst [vmem:[#allocation86_spill] sm:$0xff] %v5410_v45 }
  0xc0   : > { %v3043_v22 = vrot.slane %v3029_v38, %v4601_v17  ;;  %v2258_v18 = vpack.i.b16 %v2257_v29, %v2256_v44  ;;  %v1848_v60 = vshrl.u32 %v815_v48, 16  ;;  %v5407_v41 = vld.sshfl [vmem:[%s4573_s28 + $0x1c8] sm:$0x33 pattern:$0x73516240]  ;;  %v1849_v55 = vshrl.u32 %v824_v4, 16 }
  0xc1   : > { %6227 = vst [vmem:[#allocation85_spill] sm:$0xff] %v5407_v41  ;;  %v3468_v23 = vcombine.low %v2234_v31, %v2246_v56  ;;  %v1860_v6 = vshrl.u32 %v833_v2, 16  ;;  %v1861_v53 = vshrl.u32 %v842_v63, 16  ;;  %v2270_v1 = vpack.i.b16 %v2269_v61, %v2268_v37 }
  0xc2   : > { %v3044_v52 = vcombine.low %v3036_v43, %v3043_v22  ;;  %v1872_v40 = vshrl.u32 %v851_v7, 16  ;;  %v1873_v0 = vshrl.u32 %v860_v3, 16  ;;  %v5413_v25 = vld.sshfl [vmem:[%s4573_s28 + $0x1d0] sm:$0x33 pattern:$0x73516240]  ;;  %v1850_v56 = vpack.i.b16 %v1849_v55, %v1848_v60 }
  0xc3   : > { %6229 = vst [vmem:[#allocation87_spill] sm:$0xff] %v5413_v25  ;;  %v5416_v28 = vld.sshfl [vmem:[%s4573_s28 + $0x1d2] sm:$0x33 pattern:$0x73516240]  ;;  %v3476_v48 = vrot.slane %v3468_v23, %v4601_v17  ;;  %v1862_v27 = vpack.i.b16 %v1861_v53, %v1860_v6  ;;  %v1884_v4 = vshrl.u32 %v869_v26, 16  ;;  %v3469_v37 = vcombine.low %v2258_v18, %v2270_v1 }
  0xc4   : > { %6230 = vst [vmem:[#allocation88_spill] sm:$0xff] %v5416_v28  ;;  %v5420_v2 = vld.sshfl [vmem:[%s4573_s28 + $0x1d8] sm:$0x33 pattern:$0x73516240]  ;;  %3225 = vrot.lane.b32.xlu1 %v3044_v52, %s4488_s30  ;;  %v1874_v3 = vpack.i.b16 %v1873_v0, %v1872_v40  ;;  %v1885_v63 = vshrl.u32 %v878_v39, 16 }
  0xc5   : > { %6231 = vst [vmem:[#allocation89_spill] sm:$0xff] %v5420_v2  ;;  %v5423_v43 = vld.sshfl [vmem:[%s4573_s28 + $0x1da] sm:$0x33 pattern:$0x73516240]  ;;  %v3332_v7 = vcombine.low %v1850_v56, %v1862_v27  ;;  %v3483_v36 = vrot.slane %v3469_v37, %v4601_v17  ;;  %v2274_v29 = vshrl.u32 %v5399_v49, 16  ;;  %v5462_v37 = vpop.permute.xlu0 %2927 }
  0xc6   : > { %6232 = vst [vmem:[#allocation90_spill] sm:$0xff] %v5423_v43  ;;  %v1886_v24 = vpack.i.b16 %v1885_v63, %v1884_v4  ;;  %v5428_v19 = vld.sshfl [vmem:[%s4573_s28 + $0xc0] sm:$0x33 pattern:$0x73516240]  ;;  %v2275_v61 = vshrl.u32 %v5404_v21, 16 }
  0xc7   : > { %6233 = vst [vmem:[#allocation91_spill] sm:$0xff] %v5428_v19  ;;  %v5431_v38 = vld.sshfl [vmem:[%s4573_s28 + $0xc2] sm:$0x33 pattern:$0x73516240]  ;;  %v3340_v44 = vrot.slane %v3332_v7, %v4601_v17  ;;  %v3484_v39 = vcombine.low %v3476_v48, %v3483_v36  ;;  %v2286_v60 = vshrl.u32 %v5407_v41, 16 }
  0xc8   : > { %6234 = vst [vmem:[#allocation92_spill] sm:$0xff] %v5431_v38  ;;  %v5434_v26 = vld.sshfl [vmem:[%s4573_s28 + $0xc8] sm:$0x33 pattern:$0x73516240]  ;;  %v3333_v18 = vcombine.low %v1874_v3, %v1886_v24  ;;  %v2287_v6 = vshrl.u32 %v5410_v45, 16  ;;  %v2276_v48 = vpack.i.b16 %v2275_v61, %v2274_v29 }
  0xc9   : > { %6235 = vst [vmem:[#allocation93_spill] sm:$0xff] %v5434_v26  ;;  %v5439_v31 = vld.sshfl [vmem:[%s4573_s28 + $0xca] sm:$0x33 pattern:$0x73516240]  ;;  %v2298_v53 = vshrl.u32 %v5413_v25, 16  ;;  %3545 = vrot.lane.b32.xlu0 %v3484_v39, %s4489_s4 }
  0xca   : > { %6236 = vst [vmem:[#allocation94_spill] sm:$0xff] %v5439_v31  ;;  %v5442_v22 = vld.sshfl [vmem:[%s4573_s28 + $0xd0] sm:$0x33 pattern:$0x73516240]  ;;  %v2299_v52 = vshrl.u32 %v5416_v28, 16  ;;  %v3347_v0 = vrot.slane %v3333_v18, %v4601_v17  ;;  %v2288_v27 = vpack.i.b16 %v2287_v6, %v2286_v60  ;;  %v5468_v18 = vpop.permute.xlu1 %3231 }
  0xcb   : > { %6237 = vst [vmem:[#allocation95_spill] sm:$0xff] %v5442_v22  ;;  %v5447_v23 = vld.sshfl [vmem:[%s4573_s28 + $0xd2] sm:$0x33 pattern:$0x73516240]  ;;  %v2310_v1 = vshrl.u32 %v5420_v2, 16 }
  0xcc   : > { %6238 = vst [vmem:[#allocation96_spill] sm:$0xff] %v5447_v23  ;;  %v5450_v55 = vld.sshfl [vmem:[%s4573_s28 + $0xd8] sm:$0x33 pattern:$0x73516240]  ;;  %v2311_v56 = vshrl.u32 %v5423_v43, 16  ;;  %v2300_v4 = vpack.i.b16 %v2299_v52, %v2298_v53  ;;  %v3348_v3 = vcombine.low %v3340_v44, %v3347_v0  ;;  %v2877_v7 = vcombine.low %v2276_v48, %v2288_v27 }
  0xcd   : > { %6239 = vst [vmem:[#allocation97_spill] sm:$0xff] %v5450_v55  ;;  %v5457_v40 = vld.sshfl [vmem:[%s4573_s28 + $0xda] sm:$0x33 pattern:$0x73516240]  ;;  %v1890_v24 = vshrl.u32 %v5428_v19, 16  ;;  %v1472_v27 = vcombine.high %v5404_v21, %v6161_v47 }
  0xce   : > { %6240 = vst [vmem:[#allocation98_spill] sm:$0xff] %v5457_v40  ;;  %v2312_v63 = vpack.i.b16 %v2311_v56, %v2310_v1  ;;  %3529 = vrot.lane.b32.xlu1 %v3348_v3, %s4489_s4  ;;  %v1891_v46 = vshrl.u32 %v5431_v38, 16  ;;  %v1902_v39 = vshrl.u32 %v5434_v26, 16  ;;  %v2885_v29 = vrot.slane %v2877_v7, %v4601_v17 }
  0xcf   : > { %v1903_v61 = vshrl.u32 %v5439_v31, 16  ;;  %v1914_v60 = vshrl.u32 %v5442_v22, 16  ;;  %v1915_v44 = vshrl.u32 %v5447_v23, 16  ;;  %v1926_v52 = vshrl.u32 %v5450_v55, 16 }
  0xd0   : > { %v2878_v36 = vcombine.low %v2300_v4, %v2312_v63  ;;  %v1892_v53 = vpack.i.b16 %v1891_v46, %v1890_v24  ;;  %v1927_v1 = vshrl.u32 %v5457_v40, 16  ;;  %v1463_v56 = vcombine.high %v5399_v49, %v6161_v47  ;;  %v5481_v4 = vpop.permute.xlu0 %2911 }
  0xd1   : > { %v1904_v0 = vpack.i.b16 %v1903_v61, %v1902_v39  ;;  %v1916_v48 = vpack.i.b16 %v1915_v44, %v1914_v60  ;;  %v1481_v7 = vcombine.high %v5407_v41, %v6161_v47  ;;  %v1490_v46 = vcombine.high %v5410_v45, %v6161_v47 }
  0xd2   : > { %v2892_v6 = vrot.slane %v2878_v36, %v4601_v17  ;;  %v1928_v63 = vpack.i.b16 %v1927_v1, %v1926_v52  ;;  %v1499_v24 = vcombine.high %v5413_v25, %v6161_v47  ;;  %v1508_v39 = vcombine.high %v5416_v28, %v6161_v47  ;;  %v5496_v52 = vpop.permute.xlu1 %3215 }
  0xd3   : > { %v2741_v36 = vcombine.low %v1892_v53, %v1904_v0  ;;  %v1517_v61 = vcombine.high %v5420_v2, %v6161_v47  ;;  %v1526_v60 = vcombine.high %v5423_v43, %v6161_v47  ;;  %v2279_v44 = vpack.i.b16 %v1472_v27, %v1463_v56 }
  0xd4   : > { %v2893_v3 = vcombine.low %v2885_v29, %v2892_v6  ;;  %v2742_v29 = vcombine.low %v1916_v48, %v1928_v63  ;;  %v2291_v6 = vpack.i.b16 %v1490_v46, %v1481_v7  ;;  %v2303_v1 = vpack.i.b16 %v1508_v39, %v1499_v24 }
  0xd5   : > { %v2749_v53 = vrot.slane %v2741_v36, %v4601_v17  ;;  %v887_v0 = vcombine.high %v5428_v19, %v6161_v47  ;;  %v896_v28 = vcombine.high %v5431_v38, %v6161_v47  ;;  %v905_v63 = vcombine.high %v5434_v26, %v6161_v47  ;;  %v5514_v38 = vpop.permute.xlu0 %2929 }
  0xd6   : > { %2939 = vrot.lane.b32.xlu0 %v2893_v3, %s4487_s29  ;;  %v2756_v2 = vrot.slane %v2742_v29, %v4601_v17  ;;  %v2315_v3 = vpack.i.b16 %v1526_v60, %v1517_v61  ;;  %v3181_v48 = vcombine.low %v2279_v44, %v2291_v6  ;;  %v914_v43 = vcombine.high %v5439_v31, %v6161_v47 }
  0xd7   : > { %v923_v36 = vcombine.high %v5442_v22, %v6161_v47  ;;  %v932_v25 = vcombine.high %v5447_v23, %v6161_v47  ;;  %v941_v19 = vcombine.high %v5450_v55, %v6161_v47  ;;  %6241 = vst [vmem:[#allocation99_spill] sm:$0xff] %v5514_v38  ;;  %v950_v6 = vcombine.high %v5457_v40, %v6161_v47 }
  0xd8   : > { %v2757_v29 = vcombine.low %v2749_v53, %v2756_v2  ;;  %v3182_v45 = vcombine.low %v2303_v1, %v2315_v3  ;;  %v3189_v44 = vrot.slane %v3181_v48, %v4601_v17  ;;  %v1895_v26 = vpack.i.b16 %v896_v28, %v887_v0  ;;  %v5521_v2 = vpop.permute.xlu1 %2913 }
  0xd9   : > { %v1907_v31 = vpack.i.b16 %v914_v43, %v905_v63  ;;  %v1919_v41 = vpack.i.b16 %v932_v25, %v923_v36  ;;  %v2280_v22 = vshrl.u32 %v1463_v56, 16  ;;  %v1931_v21 = vpack.i.b16 %v950_v6, %v941_v19  ;;  %6242 = vst [vmem:[#allocation100_spill] sm:$0xff] %v5521_v2 }
  0xda   : > { %2923 = vrot.lane.b32.xlu1 %v2757_v29, %s4487_s29  ;;  %v3196_v23 = vrot.slane %v3182_v45, %v4601_v17  ;;  %v2281_v55 = vshrl.u32 %v1472_v27, 16  ;;  %v2292_v49 = vshrl.u32 %v1481_v7, 16  ;;  %v2293_v1 = vshrl.u32 %v1490_v46, 16 }
  0xdb   : > { %v3045_v53 = vcombine.low %v1895_v26, %v1907_v31  ;;  %v2304_v3 = vshrl.u32 %v1499_v24, 16  ;;  %v2305_v48 = vshrl.u32 %v1508_v39, 16  ;;  %v3046_v33 = vcombine.low %v1919_v41, %v1931_v21  ;;  %v5531_v26 = vld.sshfl [vmem:[%s4573_s28 + $0x1e8] sm:$0x33 pattern:$0x73516240]  ;;  %v5533_v31 = vpop.permute.xlu0 %3233 }
  0xdc   : > { %v3197_v40 = vcombine.low %v3189_v44, %v3196_v23  ;;  %v2282_v42 = vpack.i.b16 %v2281_v55, %v2280_v22  ;;  %v2316_v56 = vshrl.u32 %v1517_v61, 16  ;;  %v2294_v29 = vpack.i.b16 %v2293_v1, %v2292_v49  ;;  %6245 = vst [vmem:[#allocation103_spill] sm:$0xff] %v5531_v26  ;;  %6246 = vst [vmem:[#allocation104_spill] sm:$0xff] %v5533_v31 }
  0xdd   : > { %v3053_v45 = vrot.slane %v3045_v53, %v4601_v17  ;;  %v2306_v27 = vpack.i.b16 %v2305_v48, %v2304_v3  ;;  %v2317_v7 = vshrl.u32 %v1526_v60, 16  ;;  %v3060_v21 = vrot.slane %v3046_v33, %v4601_v17  ;;  %v5538_v49 = vld.sshfl [vmem:[%s4573_s28 + $0x1ea] sm:$0x33 pattern:$0x73516240] }
  0xde   : > { %3243 = vrot.lane.b32.xlu0 %v3197_v40, %s4488_s30  ;;  %v1896_v41 = vshrl.u32 %v887_v0, 16  ;;  %v1897_v22 = vshrl.u32 %v896_v28, 16  ;;  %v1908_v23 = vshrl.u32 %v905_v63, 16  ;;  %6247 = vst [vmem:[#allocation105_spill] sm:$0xff] %v5538_v49  ;;  %v3485_v46 = vcombine.low %v2282_v42, %v2294_v29  ;;  %v5552_v63 = vpop.permute.xlu1 %3217 }
  0xdf   : > { %v2318_v55 = vpack.i.b16 %v2317_v7, %v2316_v56  ;;  %v1909_v24 = vshrl.u32 %v914_v43, 16  ;;  %v1920_v39 = vshrl.u32 %v923_v36, 16  ;;  %v5541_v61 = vld.sshfl [vmem:[%s4573_s28 + $0x1f0] sm:$0x33 pattern:$0x73516240]  ;;  %v3061_v44 = vcombine.low %v3053_v45, %v3060_v21  ;;  %v5560_v45 = vpop.permute.xlu0 %3535 }
  0xe0   : > { %6248 = vst [vmem:[#allocation106_spill] sm:$0xff] %v5541_v61  ;;  %v5544_v60 = vld.sshfl [vmem:[%s4573_s28 + $0x1f2] sm:$0x33 pattern:$0x73516240]  ;;  %v1898_v40 = vpack.i.b16 %v1897_v22, %v1896_v41  ;;  %v1921_v53 = vshrl.u32 %v932_v25, 16  ;;  %v3493_v43 = vrot.slane %v3485_v46, %v4601_v17 }
  0xe1   : > { %6249 = vst [vmem:[#allocation107_spill] sm:$0xff] %v5544_v60  ;;  %v1932_v33 = vshrl.u32 %v941_v19, 16  ;;  %v5547_v0 = vld.sshfl [vmem:[%s4573_s28 + $0x1f8] sm:$0x33 pattern:$0x73516240]  ;;  %v3486_v42 = vcombine.low %v2306_v27, %v2318_v55  ;;  %v1910_v36 = vpack.i.b16 %v1909_v24, %v1908_v23  ;;  %3227 = vrot.lane.b32.xlu1 %v3061_v44, %s4488_s30 }
  0xe2   : > { %6250 = vst [vmem:[#allocation108_spill] sm:$0xff] %v5547_v0  ;;  %v5550_v28 = vld.sshfl [vmem:[%s4573_s28 + $0x1fa] sm:$0x33 pattern:$0x73516240]  ;;  %6252 = vst [vmem:[#allocation110_spill] sm:$0xff] %v5552_v63  ;;  %v1922_v25 = vpack.i.b16 %v1921_v53, %v1920_v39  ;;  %v5586_v53 = vpop.permute.xlu1 %3519 }
  0xe3   : > { %6251 = vst [vmem:[#allocation109_spill] sm:$0xff] %v5550_v28  ;;  %v1933_v1 = vshrl.u32 %v950_v6, 16  ;;  %v3500_v19 = vrot.slane %v3486_v42, %v4601_v17  ;;  %v3349_v48 = vcombine.low %v1898_v40, %v1910_v36  ;;  %v5558_v56 = vld.sshfl [vmem:[%s4573_s28 + $0xe0] sm:$0x33 pattern:$0x73516240]  ;;  %v5596_v2 = vpop.permute.xlu0 %3537 }
  0xe4   : > { %6253 = vst [vmem:[#allocation111_spill] sm:$0xff] %v5558_v56  ;;  %v5563_v29 = vld.sshfl [vmem:[%s4573_s28 + $0xe2] sm:$0x33 pattern:$0x73516240]  ;;  %v2322_v22 = vshrl.u32 %v5524_v62, 16 }
  0xe5   : > { %v1934_v3 = vpack.i.b16 %v1933_v1, %v1932_v33  ;;  %6254 = vst [vmem:[#allocation112_spill] sm:$0xff] %v5563_v29  ;;  %v5566_v27 = vld.sshfl [vmem:[%s4573_s28 + $0xe8] sm:$0x33 pattern:$0x73516240]  ;;  %v3501_v6 = vcombine.low %v3493_v43, %v3500_v19  ;;  %v3357_v41 = vrot.slane %v3349_v48, %v4601_v17  ;;  %v2323_v46 = vshrl.u32 %v5528_v57, 16 }
  0xe6   : > { %6255 = vst [vmem:[#allocation113_spill] sm:$0xff] %v5566_v27  ;;  %v5569_v7 = vld.sshfl [vmem:[%s4573_s28 + $0xea] sm:$0x33 pattern:$0x73516240]  ;;  %v2334_v24 = vshrl.u32 %v5531_v26, 16 }
  0xe7   : > { %6256 = vst [vmem:[#allocation114_spill] sm:$0xff] %v5569_v7  ;;  %v3350_v21 = vcombine.low %v1922_v25, %v1934_v3  ;;  %v5574_v23 = vld.sshfl [vmem:[%s4573_s28 + $0xf0] sm:$0x33 pattern:$0x73516240]  ;;  %v2335_v39 = vshrl.u32 %v5538_v49, 16  ;;  %3547 = vrot.lane.b32.xlu0 %v3501_v6, %s4489_s4  ;;  %v2324_v25 = vpack.i.b16 %v2323_v46, %v2322_v22  ;;  %v5604_v46 = vpop.permute.xlu1 %3521 }
  0xe8   : > { %6257 = vst [vmem:[#allocation115_spill] sm:$0xff] %v5574_v23  ;;  %v5577_v55 = vld.sshfl [vmem:[%s4573_s28 + $0xf2] sm:$0x33 pattern:$0x73516240]  ;;  %v2346_v44 = vshrl.u32 %v5541_v61, 16 }
  0xe9   : > { %6258 = vst [vmem:[#allocation116_spill] sm:$0xff] %v5577_v55  ;;  %v5584_v40 = vld.sshfl [vmem:[%s4573_s28 + $0xf8] sm:$0x33 pattern:$0x73516240]  ;;  %6260 = vst [vmem:[#allocation118_spill] sm:$0xff] %v5586_v53  ;;  %v3364_v33 = vrot.slane %v3350_v21, %v4601_v17  ;;  %v2336_v19 = vpack.i.b16 %v2335_v39, %v2334_v24 }
  0xea   : > { %6259 = vst [vmem:[#allocation117_spill] sm:$0xff] %v5584_v40  ;;  %v2347_v42 = vshrl.u32 %v5544_v60, 16  ;;  %v2358_v43 = vshrl.u32 %v5547_v0, 16  ;;  %v2359_v36 = vshrl.u32 %v5550_v28, 16  ;;  %v1938_v21 = vshrl.u32 %v5558_v56, 16 }
  0xeb   : > { %v5594_v1 = vld.sshfl [vmem:[%s4573_s28 + $0xfa] sm:$0x33 pattern:$0x73516240]  ;;  %v3365_v3 = vcombine.low %v3357_v41, %v3364_v33  ;;  %v2894_v31 = vcombine.low %v2324_v25, %v2336_v19  ;;  %v1939_v38 = vshrl.u32 %v5563_v29, 16  ;;  %v1950_v5 = vshrl.u32 %v5566_v27, 16 }
  0xec   : > { %6261 = vst [vmem:[#allocation119_spill] sm:$0xff] %v5594_v1  ;;  %v2348_v48 = vpack.i.b16 %v2347_v42, %v2346_v44  ;;  %v2360_v63 = vpack.i.b16 %v2359_v36, %v2358_v43  ;;  %v1951_v22 = vshrl.u32 %v5569_v7, 16  ;;  %v1962_v24 = vshrl.u32 %v5574_v23, 16 }
  0xed   : > { %3531 = vrot.lane.b32.xlu1 %v3365_v3, %s4489_s4  ;;  %v2902_v53 = vrot.slane %v2894_v31, %v4601_v17  ;;  %v1963_v39 = vshrl.u32 %v5577_v55, 16  ;;  %v1940_v44 = vpack.i.b16 %v1939_v38, %v1938_v21  ;;  %v1975_v31 = vshrl.u32 %v5594_v1, 16  ;;  %v5617_v3 = vpop.permute.xlu0 %2931 }
  0xee   : > { %v2895_v6 = vcombine.low %v2348_v48, %v2360_v63  ;;  %v1974_v63 = vshrl.u32 %v5584_v40, 16  ;;  %v1952_v33 = vpack.i.b16 %v1951_v22, %v1950_v5  ;;  %v1535_v42 = vcombine.high %v5524_v62, %v6161_v47  ;;  %6262 = vst [vmem:[#allocation120_spill] sm:$0xff] %v5617_v3 }
  0xef   : > { %v1964_v36 = vpack.i.b16 %v1963_v39, %v1962_v24  ;;  %v1544_v25 = vcombine.high %v5528_v57, %v6161_v47  ;;  %v1553_v19 = vcombine.high %v5531_v26, %v6161_v47  ;;  %v1562_v5 = vcombine.high %v5538_v49, %v6161_v47 }
  0xf0   : > { %v2909_v41 = vrot.slane %v2895_v6, %v4601_v17  ;;  %v1976_v48 = vpack.i.b16 %v1975_v31, %v1974_v63  ;;  %v2758_v6 = vcombine.low %v1940_v44, %v1952_v33  ;;  %v1571_v38 = vcombine.high %v5541_v61, %v6161_v47  ;;  %v5633_v33 = vpop.permute.xlu1 %2915 }
  0xf1   : > { %v1589_v21 = vcombine.high %v5547_v0, %v6161_v47  ;;  %v1598_v22 = vcombine.high %v5550_v28, %v6161_v47  ;;  %v2339_v63 = vpack.i.b16 %v1562_v5, %v1553_v19  ;;  %v959_v44 = vcombine.high %v5558_v56, %v6161_v47  ;;  %6263 = vst [vmem:[#allocation121_spill] sm:$0xff] %v5633_v33  ;;  %v5650_v62 = vpop.permute.xlu0 %3235 }
  0xf2   : > { %v2910_v43 = vcombine.low %v2902_v53, %v2909_v41  ;;  %v1580_v53 = vcombine.high %v5544_v60, %v6161_v47  ;;  %v2327_v41 = vpack.i.b16 %v1544_v25, %v1535_v42  ;;  %v2759_v24 = vcombine.low %v1964_v36, %v1976_v48  ;;  %6264 = vst [vmem:[#allocation122_spill] sm:$0xff] %v5650_v62 }
  0xf3   : > { %v2766_v39 = vrot.slane %v2758_v6, %v4601_v17  ;;  %v968_v60 = vcombine.high %v5563_v29, %v6161_v47  ;;  %v977_v0 = vcombine.high %v5566_v27, %v6161_v47  ;;  %v986_v36 = vcombine.high %v5569_v7, %v6161_v47 }
  0xf4   : > { %2941 = vrot.lane.b32.xlu0 %v2910_v43, %s4487_s29  ;;  %v2351_v31 = vpack.i.b16 %v1580_v53, %v1571_v38  ;;  %v2363_v43 = vpack.i.b16 %v1598_v22, %v1589_v21  ;;  %v2773_v28 = vrot.slane %v2759_v24, %v4601_v17  ;;  %v3198_v61 = vcombine.low %v2327_v41, %v2339_v63  ;;  %v5655_v33 = vpop.permute.xlu1 %3219 }
  0xf5   : > { %v995_v48 = vcombine.high %v5574_v23, %v6161_v47  ;;  %v1004_v49 = vcombine.high %v5577_v55, %v6161_v47  ;;  %v1013_v26 = vcombine.high %v5584_v40, %v6161_v47  ;;  %v1022_v57 = vcombine.high %v5594_v1, %v6161_v47 }
  0xf6   : > { %v3199_v6 = vcombine.low %v2351_v31, %v2363_v43  ;;  %v2774_v24 = vcombine.low %v2766_v39, %v2773_v28  ;;  %v3206_v41 = vrot.slane %v3198_v61, %v4601_v17  ;;  %v1943_v63 = vpack.i.b16 %v968_v60, %v959_v44 }
  0xf7   : > { %v1955_v7 = vpack.i.b16 %v986_v36, %v977_v0  ;;  %v1967_v23 = vpack.i.b16 %v1004_v49, %v995_v48  ;;  %v1979_v31 = vpack.i.b16 %v1022_v57, %v1013_v26  ;;  %v2328_v43 = vshrl.u32 %v1535_v42, 16 }
  0xf8   : > { %v3213_v27 = vrot.slane %v3199_v6, %v4601_v17  ;;  %2925 = vrot.lane.b32.xlu1 %v2774_v24, %s4487_s29  ;;  %v2329_v29 = vshrl.u32 %v1544_v25, 16  ;;  %v2340_v40 = vshrl.u32 %v1553_v19, 16  ;;  %v2341_v56 = vshrl.u32 %v1562_v5, 16  ;;  %v5660_v19 = vpop.permute.xlu0 %3539 }
  0xf9   : > { %v3062_v55 = vcombine.low %v1943_v63, %v1955_v7  ;;  %v3063_v1 = vcombine.low %v1967_v23, %v1979_v31  ;;  %v2352_v28 = vshrl.u32 %v1571_v38, 16  ;;  %v2353_v39 = vshrl.u32 %v1580_v53, 16  ;;  %v5663_v31 = vpop.permute.xlu1 %3523 }
  0xfa   : > { %v3214_v47 = vcombine.low %v3206_v41, %v3213_v27  ;;  %v2330_v62 = vpack.i.b16 %v2329_v29, %v2328_v43  ;;  %v2342_v3 = vpack.i.b16 %v2341_v56, %v2340_v40  ;;  %v2364_v6 = vshrl.u32 %v1589_v21, 16 }
  0xfb   : > { %v3070_v61 = vrot.slane %v3062_v55, %v4601_v17  ;;  %v3077_v42 = vrot.slane %v3063_v1, %v4601_v17  ;;  %v2354_v24 = vpack.i.b16 %v2353_v39, %v2352_v28  ;;  %v2365_v7 = vshrl.u32 %v1598_v22, 16  ;;  %v6267_v28 = vld [vmem:[#allocation10_spill] sm:$0xff]  ;;  %v6268_v39 = vld [vmem:[#allocation11_spill] sm:$0xff] }
  0xfc   : > { %3245 = vrot.lane.b32.xlu0 %v3214_v47, %s4488_s30  ;;  %v1944_v25 = vshrl.u32 %v959_v44, 16  ;;  %v3502_v5 = vcombine.low %v2330_v62, %v2342_v3  ;;  %v1945_v63 = vshrl.u32 %v968_v60, 16  ;;  %v1956_v27 = vshrl.u32 %v977_v0, 16 }
  0xfd   : > { %v1957_v23 = vshrl.u32 %v986_v36, 16  ;;  %v3078_v38 = vcombine.low %v3070_v61, %v3077_v42  ;;  %v2366_v53 = vpack.i.b16 %v2365_v7, %v2364_v6  ;;  %v1968_v41 = vshrl.u32 %v995_v48, 16  ;;  %v5675_v48 = vpop.permute.xlu0 %2933  ;;  %v6270_v6 = vld [vmem:[#allocation7_spill] sm:$0xff]  ;;  %v6272_v7 = vld [vmem:[#allocation13_spill] sm:$0xff] }
  0xfe   : > { %v1969_v55 = vshrl.u32 %v1004_v49, 16  ;;  %v3510_v56 = vrot.slane %v3502_v5, %v4601_v17  ;;  %v1946_v29 = vpack.i.b16 %v1945_v63, %v1944_v25  ;;  %v1980_v21 = vshrl.u32 %v1013_v26, 16  ;;  %v6273_v5 = vld [vmem:[#allocation14_spill] sm:$0xff]  ;;  %v6274_v63 = vld [vmem:[#allocation15_spill] sm:$0xff] }
  0xff   : > { %v1958_v40 = vpack.i.b16 %v1957_v23, %v1956_v27  ;;  %3229 = vrot.lane.b32.xlu1 %v3078_v38, %s4488_s30  ;;  %v3503_v1 = vcombine.low %v2354_v24, %v2366_v53  ;;  %v1981_v44 = vshrl.u32 %v1022_v57, 16  ;;  %v1997_v62 = vpack.i.b16 %v4587_v12, %v4584_v11  ;;  %v6271_v24 = vld [vmem:[#allocation12_spill] sm:$0xff] }
 0x100   : > { %v1970_v22 = vpack.i.b16 %v1969_v55, %v1968_v41  ;;  %v2009_v0 = vpack.i.b16 %v4593_v14, %v4590_v13  ;;  %v2021_v49 = vpack.i.b16 %v4599_v16, %v4596_v15  ;;  %v1985_v36 = vpack.i.b16 %v4581_v10, %v4578_v9  ;;  %v6265_v13 = vld [vmem:[#allocation8_spill] sm:$0xff]  ;;  %v6266_v14 = vld [vmem:[#allocation9_spill] sm:$0xff]  ;;  %v6269_v10 = vld [vmem:[#allocation6_spill] sm:$0xff] }
 0x101   : > { %v3366_v60 = vcombine.low %v1946_v29, %v1958_v40  ;;  %v3517_v26 = vrot.slane %v3503_v1, %v4601_v17  ;;  %v1982_v3 = vpack.i.b16 %v1981_v44, %v1980_v21  ;;  %v1613_v12 = vpack.i.b16 %v4662_v51, %v4659_v50  ;;  %v5691_v51 = vpop.permute.xlu1 %2917  ;;  %v6275_v53 = vld [vmem:[#allocation16_spill] sm:$0xff]  ;;  %v6276_v41 = vld [vmem:[#allocation17_spill] sm:$0xff]  ;;  %v6277_v29 = vld [vmem:[#allocation18_spill] sm:$0xff] }
 0x102   : > { %v2504_v11 = vcombine.low %v2009_v0, %v2021_v49  ;;  %v1625_v43 = vpack.i.b16 %v6266_v14, %v6265_v13  ;;  %v2503_v47 = vcombine.low %v1985_v36, %v1997_v62  ;;  %v1637_v61 = vpack.i.b16 %v6268_v39, %v6267_v28  ;;  %v6278_v40 = vld [vmem:[#allocation19_spill] sm:$0xff]  ;;  %v6280_v44 = vld [vmem:[#allocation21_spill] sm:$0xff] }
 0x103   : > { %v3374_v57 = vrot.slane %v3366_v60, %v4601_v17  ;;  %v3518_v15 = vcombine.low %v3510_v56, %v3517_v26  ;;  %v3367_v16 = vcombine.low %v1970_v22, %v1982_v3  ;;  %v1601_v42 = vpack.i.b16 %v6270_v6, %v6269_v10  ;;  %v6279_v22 = vld [vmem:[#allocation20_spill] sm:$0xff]  ;;  %v6281_v26 = vld [vmem:[#allocation22_spill] sm:$0xff]  ;;  %v6282_v3 = vld [vmem:[#allocation23_spill] sm:$0xff] }
 0x104   : > { %v2518_v9 = vrot.slane %v2504_v11, %v4601_v17  ;;  %v2033_v25 = vpack.i.b16 %v6272_v7, %v6271_v24  ;;  %v2045_v50 = vpack.i.b16 %v6274_v63, %v6273_v5  ;;  %v2511_v23 = vrot.slane %v2503_v47, %v4601_v17  ;;  %v5705_v11 = vpop.permute.xlu0 %3237  ;;  %v6285_v47 = vld [vmem:[#allocation26_spill] sm:$0xff]  ;;  %v6286_v28 = vld [vmem:[#allocation27_spill] sm:$0xff] }
 0x105   : > { %3549 = vrot.lane.b32.xlu0 %v3518_v15, %s4489_s4  ;;  %v3381_v27 = vrot.slane %v3367_v16, %v4601_v17  ;;  %v2368_v38 = vcombine.low %v1625_v43, %v1637_v61  ;;  %v2057_v55 = vpack.i.b16 %v6276_v41, %v6275_v53  ;;  %v2367_v56 = vcombine.low %v1601_v42, %v1613_v12  ;;  %v6283_v43 = vld [vmem:[#allocation24_spill] sm:$0xff]  ;;  %v6284_v15 = vld [vmem:[#allocation25_spill] sm:$0xff]  ;;  %v5721_v24 = vpop.permute.xlu1 %3221  ;;  %v6289_v53 = vld [vmem:[#allocation118_spill] sm:$0xff] }
 0x106   : > { %v2069_v21 = vpack.i.b16 %v6278_v40, %v6277_v29  ;;  %v2520_v1 = vcombine.low %v2033_v25, %v2045_v50  ;;  %v1649_v62 = vpack.i.b16 %v6280_v44, %v6279_v22  ;;  %v2519_v0 = vcombine.low %v2511_v23, %v2518_v9  ;;  %v6287_v23 = vld [vmem:[#allocation28_spill] sm:$0xff]  ;;  %v6290_v41 = vld [vmem:[#allocation29_spill] sm:$0xff] }
 0x107   : > { %v3382_v60 = vcombine.low %v3374_v57, %v3381_v27  ;;  %v2382_v49 = vrot.slane %v2368_v38, %v4601_v17  ;;  %v1661_v36 = vpack.i.b16 %v6282_v3, %v6281_v26  ;;  %v2375_v13 = vrot.slane %v2367_v56, %v4601_v17  ;;  %v6294_v40 = vld [vmem:[#allocation32_spill] sm:$0xff]  ;;  %v6295_v44 = vld [vmem:[#allocation33_spill] sm:$0xff] }
 0x108   : > { %v2521_v14 = vcombine.low %v2057_v55, %v2069_v21  ;;  %v2528_v12 = vrot.slane %v2520_v1, %v4601_v17  ;;  %v1673_v16 = vpack.i.b16 %v6284_v15, %v6283_v43  ;;  %v3578_v57 = vsel %vm3551_vm0, %v2519_v0, %v5462_v37  ;;  %v6297_v26 = vld [vmem:[#allocation100_spill] sm:$0xff]  ;;  %v6301_v43 = vld [vmem:[#allocation38_spill] sm:$0xff] }
 0x109   : > { %3533 = vrot.lane.b32.xlu1 %v3382_v60, %s4489_s4  ;;  %v1685_v39 = vpack.i.b16 %v6286_v28, %v6285_v47  ;;  %v2384_v61 = vcombine.low %v1649_v62, %v1661_v36  ;;  %v3618_v9 = vsel %vm3600_vm1, %v3578_v57, %v5468_v18  ;;  %v2383_v10 = vcombine.low %v2375_v13, %v2382_v49  ;;  %v6296_v62 = vld [vmem:[#allocation34_spill] sm:$0xff]  ;;  %v5757_v49 = vpop.permute.xlu1 %3525  ;;  %v6298_v36 = vld [vmem:[#allocation35_spill] sm:$0xff]  ;;  %v6299_v13 = vld [vmem:[#allocation36_spill] sm:$0xff] }
 0x10a   : > { %v2535_v6 = vrot.slane %v2521_v14, %v4601_v17  ;;  %v2081_v42 = vpack.i.b16 %v4939_v8, %v4932_v54  ;;  %v3659_v37 = vsel %vm3633_vm2, %v3618_v9, %v5560_v45  ;;  %v2093_v5 = vpack.i.b16 %v4947_v30, %v4942_v58  ;;  %v5739_v30 = vpop.permute.xlu0 %3541  ;;  %v6304_v47 = vld [vmem:[#allocation110_spill] sm:$0xff] }
 0x10b   : > { %v2385_v7 = vcombine.low %v1673_v16, %v1685_v39  ;;  %v2392_v25 = vrot.slane %v2384_v61, %v4601_v17  ;;  %v3554_v18 = vsel %vm3551_vm0, %v2383_v10, %v5481_v4  ;;  %4077 = vmatprep.subr.bf16.mxu0 %v3659_v37  ;;  %v2105_v50 = vpack.i.b16 %v4953_v59, %v4950_v20  ;;  %v6288_v4 = vld [vmem:[#allocation99_spill] sm:$0xff] }
 0x10c   : > { %v2536_v63 = vcombine.low %v2528_v12, %v2535_v6  ;;  %v2117_v54 = vpack.i.b16 %v4962_v35, %v4959_v34  ;;  %v3602_v8 = vsel %vm3600_vm1, %v3554_v18, %v5496_v52  ;;  %v2537_v45 = vcombine.low %v2081_v42, %v2093_v5  ;;  %v6291_v34 = vld [vmem:[#allocation30_spill] sm:$0xff]  ;;  %v6292_v52 = vld [vmem:[#allocation104_spill] sm:$0xff]  ;;  %v6300_v12 = vld [vmem:[#allocation37_spill] sm:$0xff] }
 0x10d   : > { %v2399_v27 = vrot.slane %v2385_v7, %v4601_v17  ;;  %v1697_v58 = vpack.i.b16 %v6287_v23, %v4972_v32  ;;  %v3635_v20 = vsel %vm3633_vm2, %v3602_v8, %v6289_v53  ;;  %v1709_v35 = vpack.i.b16 %v6291_v34, %v6290_v41  ;;  %v6293_v32 = vld [vmem:[#allocation31_spill] sm:$0xff]  ;;  %v6305_v6 = vld [vmem:[#allocation41_spill] sm:$0xff]  ;;  %v6306_v42 = vld [vmem:[#allocation42_spill] sm:$0xff] }
 0x10e   : > { %v3581_v38 = vsel %vm3551_vm0, %v2536_v63, %v6288_v4  ;;  %v2538_v59 = vcombine.low %v2105_v50, %v2117_v54  ;;  %4078 = vmatpush3.bf16.msra.mxu0 %v3635_v20  ;;  %v2545_v29 = vrot.slane %v2537_v45, %v4601_v17  ;;  %v1721_v21 = vpack.i.b16 %v6294_v40, %v6293_v32  ;;  %v6302_v16 = vld [vmem:[#allocation39_spill] sm:$0xff]  ;;  %v6308_v5 = vld [vmem:[#allocation44_spill] sm:$0xff]  ;;  %v2936_v63 = vpop.permute.xlu0 %2935  ;;  %v6311_v45 = vld [vmem:[#allocation46_spill] sm:$0xff] }
 0x10f   : > { %v2400_v55 = vcombine.low %v2392_v25, %v2399_v27  ;;  %v3620_v56 = vsel %vm3600_vm1, %v3581_v38, %v6292_v52  ;;  %v1733_v60 = vpack.i.b16 %v6296_v62, %v6295_v44  ;;  %v2401_v0 = vcombine.low %v1697_v58, %v1709_v35  ;;  %v6307_v37 = vld [vmem:[#allocation43_spill] sm:$0xff]  ;;  %v6309_v50 = vld [vmem:[#allocation120_spill] sm:$0xff]  ;;  %v6310_v27 = vld [vmem:[#allocation45_spill] sm:$0xff] }
 0x110   : > { %v3662_v1 = vsel %vm3633_vm2, %v3620_v56, %v5596_v2  ;;  %v2552_v22 = vrot.slane %v2538_v59, %v4601_v17  ;;  %v2129_v14 = vpack.i.b16 %v6299_v13, %v6298_v36  ;;  %v2141_v15 = vpack.i.b16 %v6301_v43, %v6300_v12  ;;  %v6303_v2 = vld [vmem:[#allocation40_spill] sm:$0xff]  ;;  %v6312_v58 = vld [vmem:[#allocation47_spill] sm:$0xff]  ;;  %v6314_v38 = vld [vmem:[#allocation122_spill] sm:$0xff] }
 0x111   : > { %v3557_v3 = vsel %vm3551_vm0, %v2400_v55, %v6297_v26  ;;  %4079 = vmatprep.subr.bf16.mxu0 %v3662_v1  ;;  %v2153_v57 = vpack.i.b16 %v6303_v2, %v6302_v16  ;;  %v2402_v61 = vcombine.low %v1721_v21, %v1733_v60  ;;  %v2409_v9 = vrot.slane %v2401_v0, %v4601_v17  ;;  %v6313_v4 = vld [vmem:[#allocation48_spill] sm:$0xff]  ;;  %v6315_v41 = vld [vmem:[#allocation49_spill] sm:$0xff]  ;;  %v6316_v34 = vld [vmem:[#allocation50_spill] sm:$0xff] }
 0x112   : > { %v3604_v28 = vsel %vm3600_vm1, %v3557_v3, %v6304_v47  ;;  %v2553_v39 = vcombine.low %v2545_v29, %v2552_v22  ;;  %v2165_v7 = vpack.i.b16 %v6306_v42, %v6305_v6  ;;  %v2554_v25 = vcombine.low %v2129_v14, %v2141_v15  ;;  %v6317_v29 = vld [vmem:[#allocation51_spill] sm:$0xff]  ;;  %v6318_v32 = vld [vmem:[#allocation52_spill] sm:$0xff]  ;;  %v2920_v21 = vpop.permute.xlu1 %2919  ;;  %v6319_v44 = vld [vmem:[#allocation53_spill] sm:$0xff] }
 0x113   : > { %v3638_v10 = vsel %vm3633_vm2, %v3604_v28, %v5604_v46  ;;  %v1745_v18 = vpack.i.b16 %v6308_v5, %v6307_v37  ;;  %v2416_v8 = vrot.slane %v2402_v61, %v4601_v17  ;;  %v1757_v23 = vpack.i.b16 %v6311_v45, %v6310_v27  ;;  %v6320_v62 = vld [vmem:[#allocation54_spill] sm:$0xff]  ;;  %v6321_v0 = vld [vmem:[#allocation55_spill] sm:$0xff]  ;;  %v6322_v26 = vld [vmem:[#allocation56_spill] sm:$0xff] }
 0x114   : > { %4080 = vmatpush3.bf16.msra.mxu0 %v3638_v10  ;;  %v3584_v54 = vsel %vm3551_vm0, %v2553_v39, %v6309_v50  ;;  %v1769_v46 = vpack.i.b16 %v6313_v4, %v6312_v58  ;;  %v2555_v20 = vcombine.low %v2153_v57, %v2165_v7  ;;  %v2562_v59 = vrot.slane %v2554_v25, %v4601_v17  ;;  %v6323_v36 = vld [vmem:[#allocation121_spill] sm:$0xff]  ;;  %v6325_v12 = vld [vmem:[#allocation58_spill] sm:$0xff]  ;;  %v6326_v15 = vld [vmem:[#allocation59_spill] sm:$0xff] }
 0x115   : > { %v3622_v53 = vsel %vm3600_vm1, %v3584_v54, %v6314_v38  ;;  %v1781_v35 = vpack.i.b16 %v6316_v34, %v6315_v41  ;;  %v2417_v55 = vcombine.low %v2409_v9, %v2416_v8  ;;  %v2418_v56 = vcombine.low %v1745_v18, %v1757_v23  ;;  %v6324_v14 = vld [vmem:[#allocation57_spill] sm:$0xff]  ;;  %v6327_v16 = vld [vmem:[#allocation60_spill] sm:$0xff]  ;;  %v3240_v61 = vpop.permute.xlu0 %3239  ;;  %v6329_v42 = vld [vmem:[#allocation62_spill] sm:$0xff] }
 0x116   : > { %v3665_v52 = vsel %vm3633_vm2, %v3622_v53, %v5660_v19  ;;  %v2177_v40 = vpack.i.b16 %v6318_v32, %v6317_v29  ;;  %v2569_v1 = vrot.slane %v2555_v20, %v4601_v17  ;;  %v2189_v60 = vpack.i.b16 %v6320_v62, %v6319_v44  ;;  %v6328_v6 = vld [vmem:[#allocation61_spill] sm:$0xff]  ;;  %v6330_v25 = vld [vmem:[#allocation63_spill] sm:$0xff]  ;;  %v6331_v37 = vld [vmem:[#allocation64_spill] sm:$0xff] }
 0x117   : > { %4081 = vmatprep.subr.bf16.mxu0 %v3665_v52  ;;  %v2419_v22 = vcombine.low %v1769_v46, %v1781_v35  ;;  %v2201_v3 = vpack.i.b16 %v6322_v26, %v6321_v0  ;;  %v3560_v13 = vsel %vm3551_vm0, %v2417_v55, %v6323_v36  ;;  %v2426_v19 = vrot.slane %v2418_v56, %v4601_v17  ;;  %v6332_v54 = vld [vmem:[#allocation65_spill] sm:$0xff]  ;;  %v6333_v8 = vld [vmem:[#allocation66_spill] sm:$0xff]  ;;  %v6335_v56 = vld [vmem:[#allocation68_spill] sm:$0xff] }
 0x118   : > { %v2213_v43 = vpack.i.b16 %v6325_v12, %v6324_v14  ;;  %v1793_v2 = vpack.i.b16 %v6327_v16, %v6326_v15  ;;  %v3606_v57 = vsel %vm3600_vm1, %v3560_v13, %v5655_v33  ;;  %v2570_v47 = vcombine.low %v2562_v59, %v2569_v1  ;;  %v6336_v32 = vld [vmem:[#allocation69_spill] sm:$0xff]  ;;  %v6339_v44 = vld [vmem:[#allocation112_spill] sm:$0xff]  ;;  %v6341_v0 = vld [vmem:[#allocation114_spill] sm:$0xff] }
 0x119   : > { %v2433_v28 = vrot.slane %v2419_v22, %v4601_v17  ;;  %v2571_v39 = vcombine.low %v2177_v40, %v2189_v60  ;;  %v3641_v9 = vsel %vm3633_vm2, %v3606_v57, %v5663_v31  ;;  %v1805_v7 = vpack.i.b16 %v6329_v42, %v6328_v6  ;;  %v3224_v58 = vpop.permute.xlu1 %3223  ;;  %v6337_v40 = vld [vmem:[#allocation70_spill] sm:$0xff]  ;;  %v6340_v60 = vld [vmem:[#allocation113_spill] sm:$0xff]  ;;  %v6343_v36 = vld [vmem:[#allocation72_spill] sm:$0xff] }
 0x11a   : > { %v2572_v10 = vcombine.low %v2201_v3, %v2213_v43  ;;  %v1817_v5 = vpack.i.b16 %v6331_v37, %v6330_v25  ;;  %4082 = vmatpush3.bf16.msra.mxu0 %v3641_v9  ;;  %v3587_v18 = vsel %vm3551_vm0, %v2570_v47, %v5675_v48  ;;  %v1829_v27 = vpack.i.b16 %v6333_v8, %v6332_v54  ;;  %v5845_v22 = vld [vmem:[%s188_s8] sm:$0x77]  ;;  %v6347_v15 = vld [vmem:[#allocation116_spill] sm:$0xff] }
 0x11b   : > { %v2434_v33 = vcombine.low %v2426_v19, %v2433_v28  ;;  %v2579_v50 = vrot.slane %v2571_v39, %v4601_v17  ;;  %v3624_v31 = vsel %vm3600_vm1, %v3587_v18, %v5705_v11  ;;  %v2435_v23 = vcombine.low %v1793_v2, %v1805_v7  ;;  %v6342_v3 = vld [vmem:[#allocation71_spill] sm:$0xff]  ;;  %v6344_v19 = vld [vmem:[#allocation73_spill] sm:$0xff]  ;;  %v6345_v14 = vld [vmem:[#allocation74_spill] sm:$0xff] }
 0x11c   : > { %v2586_v45 = vrot.slane %v2572_v10, %v4601_v17  ;;  %v3668_v46 = vsel %vm3633_vm2, %v3624_v31, %v5739_v30  ;;  %v2436_v48 = vcombine.low %v1817_v5, %v1829_v27  ;;  %v2237_v1 = vpack.i.b16 %v6337_v40, %v6336_v32  ;;  %v6346_v43 = vld [vmem:[#allocation115_spill] sm:$0xff]  ;;  %v6348_v2 = vld [vmem:[#allocation117_spill] sm:$0xff]  ;;  %v6351_v10 = vld [vmem:[#allocation76_spill] sm:$0xff] }
 0x11d   : > { %v3563_v4 = vsel %vm3551_vm0, %v2434_v33, %v5691_v51  ;;  %4083 = vmatprep.subr.bf16.mxu0 %v3668_v46  ;;  %v2443_v20 = vrot.slane %v2435_v23, %v4601_v17  ;;  %v1949_v26 = vpack.i.b16 %v6341_v0, %v6340_v60  ;;  %v2249_v13 = vpack.i.b16 %v6343_v36, %v6342_v3  ;;  %v6349_v57 = vld [vmem:[#allocation119_spill] sm:$0xff]  ;;  %v6352_v33 = vld [vmem:[#allocation77_spill] sm:$0xff]  ;;  %v6355_v27 = vld [vmem:[#allocation80_spill] sm:$0xff] }
 0x11e   : > { %v3608_v38 = vsel %vm3600_vm1, %v3563_v4, %v5721_v24  ;;  %v2587_v53 = vcombine.low %v2579_v50, %v2586_v45  ;;  %v2450_v59 = vrot.slane %v2436_v48, %v4601_v17  ;;  %v2261_v12 = vpack.i.b16 %v6345_v14, %v6344_v19  ;;  %v6350_v9 = vld [vmem:[#allocation75_spill] sm:$0xff]  ;;  %v6353_v50 = vld [vmem:[#allocation78_spill] sm:$0xff]  ;;  %v6356_v45 = vld [vmem:[#allocation81_spill] sm:$0xff] }
 0x11f   : > { %v3644_v11 = vsel %vm3633_vm2, %v3608_v38, %v5757_v49  ;;  %v3544_v41 = vpop.permute.xlu0 %3543  ;;  %v1961_v16 = vpack.i.b16 %v6347_v15, %v6346_v43  ;;  %v1973_v47 = vpack.i.b16 %v6349_v57, %v6348_v2  ;;  %v4067_v39 = vcombine.high %v5845_v22, %v5845_v22  ;;  %v6354_v8 = vld [vmem:[#allocation79_spill] sm:$0xff]  ;;  %v6357_v23 = vld [vmem:[#allocation82_spill] sm:$0xff]  ;;  %v6360_v14 = vld [vmem:[#allocation84_spill] sm:$0xff] }
 0x120   : > { %4084 = vmatpush3.bf16.msra.mxu0 %v3644_v11  ;;  %v3590_v51 = vsel %vm3551_vm0, %v2587_v53, %v2936_v63  ;;  %v2451_v34 = vcombine.low %v2443_v20, %v2450_v59  ;;  %v6334_v63 = vld [vmem:[#allocation67_spill] sm:$0xff]  ;;  %v1841_v6 = vpack.i.b16 %v6351_v10, %v6350_v9  ;;  %v4490_v25 = vmov 0.0   ;;  %v6358_v11 = vld [vmem:[#allocation5_spill] sm:$0xff]  ;;  %v6362_v15 = vld [vmem:[#allocation86_spill] sm:$0xff] }
 0x121   : > { %v3626_v30 = vsel %vm3600_vm1, %v3590_v51, %v3240_v61  ;;  %v2225_v29 = vpack.i.b16 %v6335_v56, %v6334_v63  ;;  %v2487_v42 = vcombine.low %v1961_v16, %v1973_v47  ;;  %3784 = vmatprep.mubr.bf16.mxu0 %v4067_v39  ;;  %v3682_v37 = vcombine.low %v4490_v25, %v4490_v25  ;;  %v6359_v19 = vld [vmem:[#allocation83_spill] sm:$0xff]  ;;  %v6361_v43 = vld [vmem:[#allocation85_spill] sm:$0xff]  ;;  %v6364_v57 = vld [vmem:[#allocation88_spill] sm:$0xff] }
 0x122   : > { %v3671_v55 = vsel %vm3633_vm2, %v3626_v30, %v3544_v41  ;;  %v3566_v24 = vsel %vm3551_vm0, %v2451_v34, %v2920_v21  ;;  %v6338_v21 = vld [vmem:[#allocation111_spill] sm:$0xff]  ;;  %v3712_v5 = vcombine.high %v4490_v25, %v4490_v25  ;;  %v2589_v18 = vcombine.low %v2249_v13, %v2261_v12  ;;  %v6366_v39 = vld [vmem:[#allocation90_spill] sm:$0xff] }
 0x123   : > { %v3528_v35 = vpop.permute.xlu1 %3527  ;;  %4085 = vmatprep.subr.bf16.mxu0 %v3671_v55  ;;  %v3610_v52 = vsel %vm3600_vm1, %v3566_v24, %v3224_v58  ;;  %v1937_v62 = vpack.i.b16 %v6339_v44, %v6338_v21  ;;  %v2588_v61 = vcombine.low %v2225_v29, %v2237_v1  ;;  %v1853_v54 = vpack.i.b16 %v6353_v50, %v6352_v33  ;;  %v6363_v2 = vld [vmem:[#allocation87_spill] sm:$0xff]  ;;  %v6372_v50 = vld [vmem:[#allocation96_spill] sm:$0xff] }
 0x124   : > { %v3647_v49 = vsel %vm3633_vm2, %v3610_v52, %v3528_v35  ;;  %v1865_v31 = vpack.i.b16 %v6355_v27, %v6354_v8  ;;  %v1877_v58 = vpack.i.b16 %v6357_v23, %v6356_v45  ;;  %v2501_v46 = vrot.slane %v2487_v42, %v4601_v17  ;;  %v6367_v10 = vld [vmem:[#allocation91_spill] sm:$0xff]  ;;  %v6373_v8 = vld [vmem:[#allocation97_spill] sm:$0xff]  ;;  %v6374_v27 = vld [vmem:[#allocation98_spill] sm:$0xff] }
 0x125   : > { %4086 = vmatpush3.bf16.msra.mxu0 %v3647_v49  ;;  %v2486_v28 = vcombine.low %v1937_v62, %v1949_v26  ;;  %v3689_v48 = vrot.slane %v3682_v37, %v4601_v17  ;;  %v3725_v59 = vrot.slane %v3712_v5, %v6358_v11  ;;  %v2596_v41 = vrot.slane %v2588_v61, %v4601_v17  ;;  %v6369_v37 = vld [vmem:[#allocation93_spill] sm:$0xff]  ;;  %v6370_v5 = vld [vmem:[#allocation94_spill] sm:$0xff]  ;;  %v6371_v33 = vld [vmem:[#allocation95_spill] sm:$0xff] }
 0x126   : > { %v2603_v51 = vrot.slane %v2589_v18, %v4601_v17  ;;  %v2452_v34 = vcombine.low %v1841_v6, %v1853_v54  ;;  %v2453_v30 = vcombine.low %v1865_v31, %v1877_v58  ;;  %v2273_v12 = vpack.i.b16 %v6360_v14, %v6359_v19  ;;  %v6368_v6 = vld [vmem:[#allocation92_spill] sm:$0xff] }
 0x127   : > { %v2494_v7 = vrot.slane %v2486_v28, %v4601_v17  ;;  %v3696_v53 = vcombine.low %v3689_v48, %v3689_v48  ;;  %v3697_v20 = vcombine.high %v3689_v48, %v3689_v48  ;;  %v2285_v16 = vpack.i.b16 %v6362_v15, %v6361_v43  ;;  %v6365_v28 = vld [vmem:[#allocation89_spill] sm:$0xff] }
 0x128   : > { %v2604_v56 = vcombine.low %v2596_v41, %v2603_v51  ;;  %v2460_v29 = vrot.slane %v2452_v34, %v4601_v17  ;;  %v2467_v32 = vrot.slane %v2453_v30, %v4601_v17  ;;  %v2297_v47 = vpack.i.b16 %v6364_v57, %v6363_v2 }
 0x129   : > { %v5876_v38 = vcombine.low %v2494_v7, %v2501_v46  ;;  %v5882_v55 = vrot.slane %v3696_v53, %v6358_v11  ;;  %v3711_v24 = vrot.slane %v3697_v20, %v6358_v11  ;;  %v2309_v61 = vpack.i.b16 %v6366_v39, %v6365_v28 }
 0x12a   : > { %v2468_v44 = vcombine.low %v2460_v29, %v2467_v32  ;;  %v2605_v9 = vcombine.low %v2273_v12, %v2285_v16  ;;  %v1889_v42 = vpack.i.b16 %v6368_v6, %v6367_v10  ;;  %v1901_v18 = vpack.i.b16 %v6370_v5, %v6369_v37  ;;  %v6375_v32 = vld [vmem:[#allocation101_spill] sm:$0xff] }
 0x12b   : > { %v2938_v4 = vpop.permute.xlu0 %2937  ;;  %v3727_v49 = vcombine.high %v5882_v55, %v4490_v25  ;;  %v3728_v63 = vcombine.low %v3711_v24, %v3725_v59  ;;  %v3729_v40 = vcombine.high %v3711_v24, %v3725_v59  ;;  %v2606_v7 = vcombine.low %v2297_v47, %v2309_v61 }
 0x12c   : > { %v3593_v21 = vsel %vm3551_vm0, %v2604_v56, %v2938_v4  ;;  %v1913_v54 = vpack.i.b16 %v6372_v50, %v6371_v33  ;;  %v1925_v31 = vpack.i.b16 %v6374_v27, %v6373_v8  ;;  %v2613_v23 = vrot.slane %v2605_v9, %v4601_v17 }
 0x12d   : > { %3731 = vrot.lane.b32.xlu0 %v3727_v49, %s4487_s29  ;;  %3735 = vrot.lane.b32.xlu1 %v3728_v63, %s4488_s30  ;;  %v2620_v58 = vrot.slane %v2606_v7, %v4601_v17  ;;  %v2469_v4 = vcombine.low %v1889_v42, %v1901_v18  ;;  %v4066_v37 = vcombine.low %v5845_v22, %v5845_v22  ;;  %s5976_s29 = scalar_lea.hbm %s6023_s3, %s4110_s27  ;;  %s5979_s30 = scalar_lea.sflag [#allocation3], %s176_s20 }
 0x12e   : > { %v2470_v46 = vcombine.low %v1913_v54, %v1925_v31  ;;  %v3726_v5 = vcombine.low %v5882_v55, %v4490_v25 }
 0x12f   : > { %v2922_v35 = vpop.permute.xlu1 %2921  ;;  %v2621_v20 = vcombine.low %v2613_v23, %v2620_v58  ;;  %v2477_v59 = vrot.slane %v2469_v4, %v4601_v17  ;;  %v3865_v4 = vld [vmem:[%s6022_s2] sm:$0x3] }
 0x130   : > { %v3569_v26 = vsel %vm3551_vm0, %v2468_v44, %v2922_v35  ;;  %v2484_v41 = vrot.slane %v2470_v46, %v4601_v17  ;;  %v6378_v44 = vld [vmem:[#allocation105_spill] sm:$0xff]  ;;  %v3903_v55 = vsel %vm3901_vm3, %v3865_v4, 0  ;;  %4108 = vmatprep.subr.msk.bf16.mxu1 %vm3901_vm3, %v3865_v4 }
 0x131   : > { %v3242_v52 = vpop.permute.xlu0 %3241  ;;  %3739 = vrot.lane.b32.xlu0 %v3729_v40, %s4489_s4  ;;  %v6376_v40 = vld [vmem:[#allocation102_spill] sm:$0xff]  ;;  %4103 = vmatpush3.bf16.msra.mxu1 %v3903_v55  ;;  %s4420_s4 = scalar_lea.vmem %s5969_s26, 160 }
 0x132   : > { %v3628_v62 = vsel %vm3600_vm1, %v3593_v21, %v3242_v52  ;;  %v2485_v30 = vcombine.low %v2477_v59, %v2484_v41  ;;  %v6377_v21 = vld [vmem:[#allocation103_spill] sm:$0xff]  ;;  %p4421_p11 = scmp.ne.s32.totalorder %s5969_s26, %s4420_s4  ;;  %p4428_p1 = scmp.lt.s32.totalorder %s4426_s7, %s4420_s4 }
 0x134   : > { %p4422_p12 = pnand %p4421_p11, %p4555_p5  ;;  %p4429_p2 = por %p4428_p1, %p4427_p0 }
 0x136   : > { %v3226_v1 = vpop.permute.xlu1 %3225  ;;  %p4423_p13 = pneg %p4422_p12 }
 0x137   : > { %v3612_v3 = vsel %vm3600_vm1, %v3569_v26, %v3226_v1  ;;  %v2321_v1 = vpack.i.b16 %v6376_v40, %v6375_v32 }
 0x138   : > { %p4430_p3 = pnand %p4429_p2, %p4423_p13 }
 0x13b   : > { %v3546_v60 = vpop.permute.xlu0 %3545 }
 0x13c   : > { %v3674_v0 = vsel %vm3633_vm2, %v3628_v62, %v3546_v60  ;;  %v2333_v62 = vpack.i.b16 %v6378_v44, %v6377_v21  ;;  %v6379_v60 = vld [vmem:[#allocation106_spill] sm:$0xff] }
 0x13d   : > { %4087 = vmatprep.subr.bf16.mxu0 %v3674_v0  ;;  %v6380_v0 = vld [vmem:[#allocation107_spill] sm:$0xff] }
 0x13e   : > { %v2345_v26 = vpack.i.b16 %v6380_v0, %v6379_v60  ;;  %v2622_v19 = vcombine.low %v2321_v1, %v2333_v62 }
 0x140   : > { %v3530_v36 = vpop.permute.xlu1 %3529  ;;  %v2630_v43 = vrot.slane %v2622_v19, %v4601_v17 }
 0x141   : > { %v3650_v13 = vsel %vm3633_vm2, %v3612_v3, %v3530_v36  ;;  %v6381_v3 = vld [vmem:[#allocation108_spill] sm:$0xff]  ;;  %v6382_v36 = vld [vmem:[#allocation109_spill] sm:$0xff] }
 0x142   : > { %4088 = vmatpush3.bf16.msra.mxu0 %v3650_v13  ;;  %v2357_v13 = vpack.i.b16 %v6382_v36, %v6381_v3 }
 0x144   : > { %v2623_v14 = vcombine.low %v2345_v26, %v2357_v13 }
 0x146   : > { %v2637_v15 = vrot.slane %v2623_v14, %v4601_v17 }
 0x148   : > { %v2940_v45 = vpop.permute.xlu0 %2939  ;;  %v2638_v57 = vcombine.low %v2630_v43, %v2637_v15 }
 0x149   : > { %v3596_v34 = vsel %vm3551_vm0, %v2621_v20, %v2940_v45 }
 0x14c   : > { %v2924_v48 = vpop.permute.xlu1 %2923 }
 0x14d   : > { %v3572_v49 = vsel %vm3551_vm0, %v2485_v30, %v2924_v48 }
 0x150   : > { %v3244_v53 = vpop.permute.xlu0 %3243 }
 0x151   : > { %v3630_v35 = vsel %vm3600_vm1, %v3596_v34, %v3244_v53 }
 0x153   : > { %v3228_v51 = vpop.permute.xlu1 %3227 }
 0x154   : > { %v3614_v63 = vsel %vm3600_vm1, %v3572_v49, %v3228_v51 }
 0x159   : > { %v3548_v24 = vpop.permute.xlu0 %3547 }
 0x15a   : > { %v3677_v52 = vsel %vm3633_vm2, %v3630_v35, %v3548_v24 }
 0x15b   : > { %4089 = vmatprep.subr.bf16.mxu0 %v3677_v52 }
 0x15f   : > { %v3532_v56 = vpop.permute.xlu1 %3531 }
 0x160   : > { %v3653_v29 = vsel %vm3633_vm2, %v3614_v63, %v3532_v56 }
 0x161   : > { %4090 = vmatpush3.bf16.msra.mxu0 %v3653_v29 }
 0x166   : > { %v2942_v12 = vpop.permute.xlu0 %2941 }
 0x167   : > { %v3599_v28 = vsel %vm3551_vm0, %v2638_v57, %v2942_v12 }
 0x16a   : > { %v2926_v16 = vpop.permute.xlu1 %2925 }
 0x16b   : > { %v3575_v10 = vsel %vm3551_vm0, %v5876_v38, %v2926_v16 }
 0x16e   : > { %v3246_v2 = vpop.permute.xlu0 %3245 }
 0x16f   : > { %v3632_v39 = vsel %vm3600_vm1, %v3599_v28, %v3246_v2 }
 0x171   : > { %v3230_v47 = vpop.permute.xlu1 %3229 }
 0x172   : > { %v3616_v6 = vsel %vm3600_vm1, %v3575_v10, %v3230_v47 }
 0x177   : > { %v3550_v61 = vpop.permute.xlu0 %3549 }
 0x178   : > { %v3680_v9 = vsel %vm3633_vm2, %v3632_v39, %v3550_v61 }
 0x179   : > { %4091 = vmatprep.subr.bf16.mxu0 %v3680_v9 }
 0x17b   : > { %v3534_v42 = vpop.permute.xlu1 %3533 }
 0x17c   : > { %v3656_v7 = vsel %vm3633_vm2, %v3616_v6, %v3534_v42 }
 0x17d   : > { %4092 = vmatpush3.bf16.msra.mxu0 %v3656_v7 }
 0x180   : > { %3785 = vmatmul.mubr.bf16.vlgmr.msra.gmra.mrb[0].mxu0 %v4066_v37 }
 0x19f   : > { %v3732_v18 = vpop.permute.xlu0 %3731  ;;  %v3736_v50 = vpop.permute.xlu1 %3735 }
 0x1a0   : > { %v3742_v33 = vsel %vm3551_vm0, %v3726_v5, %v3732_v18 }
 0x1a1   : > { %v3743_v54 = vsel %vm3600_vm1, %v3742_v33, %v3736_v50 }
 0x1a3   : > { %v3740_v38 = vpop.permute.xlu0 %3739 }
 0x1a4   : > { %v3744_v23 = vsel %vm3633_vm2, %v3743_v54, %v3740_v38 }
 0x253   : > { %v4093_v8 = vpop.f32.mrb[0].mxu0 }
 0x254   : > { %v4094_v27 = vpop.f32.mrb[1].mxu0 }
 0x255   : > { %v4095_v31 = vadd.f32 %v4094_v27, %v4093_v8  ;;  %v4096_v45 = vpop.f32.mrb[2].mxu0 }
 0x256   : > { %v4097_v58 = vpop.f32.mrb[3].mxu0 }
 0x257   : > { %v3787_v22 = vadd.f32 %v4095_v31, %v3744_v23 }
 0x259   : > { %3796 = vrot.lane.b32.xlu0 %v3787_v22, %s4491_s11  ;;  %3793 = vrot.lane.b32.xlu1 %v3787_v22, %s4492_s17 }
 0x25d   : > { %3799 = vrot.lane.b32.xlu1 %v3787_v22, %s4493_s19 }
 0x2cb   : > { %v3797_v46 = vpop.permute.xlu0 %3796  ;;  %v3794_v48 = vpop.permute.xlu1 %3793 }
 0x2cc   : > { %v3802_v53 = vcombine.low %v3787_v22, %v3797_v46  ;;  %v3803_v20 = vcombine.high %v3787_v22, %v3797_v46 }
 0x2ce   : > { %v3810_v34 = vrot.slane %v3802_v53, %v4601_v17  ;;  %v3817_v30 = vrot.slane %v3803_v20, %v4601_v17 }
 0x2cf   : > { %v3800_v59 = vpop.permute.xlu1 %3799 }
 0x2d0   : > { %v3818_v41 = vcombine.low %v3794_v48, %v3800_v59  ;;  %v3819_v51 = vcombine.high %v3794_v48, %v3800_v59 }
 0x2d2   : > { %v3826_v35 = vrot.slane %v3818_v41, %v4601_v17  ;;  %v3833_v24 = vrot.slane %v3819_v51, %v4601_v17 }
 0x2d4   : > { %v3834_v52 = vcombine.low %v3810_v34, %v3826_v35  ;;  %v3835_v49 = vcombine.high %v3810_v34, %v3826_v35  ;;  %v3850_v63 = vcombine.low %v3817_v30, %v3833_v24 }
 0x2d6   : > { %v3842_v56 = vrot.slane %v3834_v52, %v6358_v11  ;;  %v3849_v29 = vrot.slane %v3835_v49, %v6358_v11  ;;  %v3859_v32 = vrot.slane %v3850_v63, %v6358_v11 }
 0x2d8   : > { %v3851_v40 = vcombine.high %v3842_v56, %v4490_v25  ;;  %v3852_v1 = vcombine.high %v3849_v29, %v4490_v25  ;;  %v3864_v62 = vpack.c.bf16 %v3859_v32, %v3859_v32 }
 0x2da   : > { %v4068_v21 = vpack.c.bf16 %v3851_v40, %v3842_v56  ;;  %v4069_v44 = vpack.c.bf16 %v3852_v1, %v3849_v29  ;;  %v3894_v3 = vrot.slane %v3864_v62, %v4601_v17 }
 0x2dc   : > { %v3879_v60 = vrot.slane %v4068_v21, %v4601_v17  ;;  %v3886_v0 = vrot.slane %v4069_v44, %v4601_v17 }
 0x2de   : > { %v3887_v26 = vcombine.low %v3879_v60, %v3886_v0 }
 0x2e0   : > { %4104 = vmatprep.mubr.msk.bf16.mxu1 %vm3551_vm0, %v3887_v26 }
 0x2e1   : > { %4105 = vmatmul.mubr.msk.bf16.vlgmr.msra.gmra.mrb[0].mxu1 %vm3551_vm0, %v3894_v3 }
 0x3b4   : > { %v4106_v11 = vpop.f32.mrb[0].mxu1 }
 0x3b5   : > { %v3963_v25 = vpack.c.bf16 %v4106_v11, %v4106_v11  ;;  %v3939_v36 = vpop.f32.mrb[1].mxu1 }
 0x3b6   : > { %v3955_v13 = vcombine.high %v3939_v36, %v3939_v36  ;;  %v3959_v19 = vpack.c.bf16 %v3939_v36, %v3939_v36  ;;  %v4107_v14 = vpop.f32.mrb[2].mxu1 }
 0x3b7   : > { %3969 = vst.msk [vmem:[%s178_s25 + $0x8] sm:$0x3] %vm3964_vm4, %v3963_v25  ;;  %v3942_v17 = vpop.f32.mrb[3].mxu1 }
 0x3b8   : > { %v3960_v12 = vpack.c.bf16 %v3955_v13, %v3955_v13  ;;  %3965 = vst.msk [vmem:[%s178_s25] sm:$0x3] %vm3964_vm4, %v3959_v19  ;;  %v3956_v43 = vcombine.high %v3942_v17, %v3942_v17  ;;  %v3961_v15 = vpack.c.bf16 %v3942_v17, %v3942_v17 }
 0x3ba   : > { %3966 = vst.msk [vmem:[%s178_s25 + $0x2] sm:$0x3] %vm3964_vm4, %v3960_v12  ;;  %v3962_v16 = vpack.c.bf16 %v3956_v43, %v3956_v43  ;;  %3967 = vst.msk [vmem:[%s178_s25 + $0x4] sm:$0x3] %vm3964_vm4, %v3961_v15 }
 0x3bc   : > { %3968 = vst.msk [vmem:[%s178_s25 + $0x6] sm:$0x3] %vm3964_vm4, %v3962_v16 }
 0x3bd   : > { %4433 = shalt.err (!%p4430_p3)
}
 0x3be   : > { %s4434_s8 = scalar_lea.hbm %s5976_s29, 160  ;;  %s4438_s11 = scalar_lea.hbm %s6023_s3, 640 }
 0x3bf   : > { %p4435_p4 = scmp.ne.s32.totalorder %s5976_s29, %s4434_s8  ;;  %p4439_p9 = scmp.lt.u32.totalorder %s5976_s29, %s6023_s3 }
 0x3c0   : > { %p4440_p10 = scmp.lt.u32.totalorder %s4438_s11, %s4434_s8  ;;  %p4442_p12 = scmp.lt.u32.totalorder %s4434_s8, %s5976_s29 }
 0x3c1   : > { %p4436_p7 = pnand %p4435_p4, %p4555_p5 }
 0x3c2   : > { %p4441_p11 = por %p4440_p10, %p4439_p9 }
 0x3c3   : > { %p4437_p8 = pneg %p4436_p7 }
 0x3c4   : > { %p4443_p13 = por %p4442_p12, %p4441_p11 }
 0x3c6   : > { %p4444_p0 = pnand %p4443_p13, %p4437_p8 }
 0x3c8   : > { %4447 = shalt.err (!%p4444_p0)
}
 0x3c9   : > { %s4495_s20 = smov 32   ;;  %s4496_s24 = smov 2  }
 0x3ca   : > { %4111 = dma.vmem_to_hbm [thread:$0]  (%p4555_p5), %s5969_s26, 160, %s5976_s29, %s5979_s30, %s4495_s20, %s4495_s20, %s4496_s24  }
 0x3cb PF: > { %p4117_p1 = scmp.ge.s32.totalorder %s4482_s15, 2  ;;  %s3999_s25 = sand.u32 1, %s4470_s12  }
 0x3cc   : > { %s4000_s27 = scalar_lea.sflag [#allocation3], %s3999_s25 }
 0x3cd   : > { %p4114_p2 = pnand %p4117_p1, %p4559_p6 }
 0x3cf   : > { %4465 = dma.done.wait (!%p4114_p2), %s4000_s27, 160  }
 0x3d0   : > { %4467 = vsyncadd (!%p4114_p2), %s4000_s27, 4294967136  ;;  %p13_p3 = scmp.ge.s32.totalorder %s4542_s18, 6   ;;  %s6383_s12 = smov %s4474_s13 }
 0x3d1   : > { %s6384_s13 = smov %s4478_s14  ;;  %s6385_s14 = smov %s4553_s21 }
 0x3d2   : > { %s6386_s15 = smov %s4542_s18  ;;  %15 = sbr.rel (!%p13_p3) target bundleno = 3 (0x3), region = 70 }
 0x3d9   :  { %4005 = vsyncpa [#allocation3], 1 }
 0x3da   :  { %4007 = vsyncpa [#allocation3 + $0x1], 1 }

</bundles_post_ra>
